<compile_context>
chip_gen: v5e
topology: v5e:2x2
jax: 0.10.0
libtpu: 0.0.40
codegen_flags: <defaults>
</compile_context>

<pallas_src>
import math

import jax
import jax.numpy as jnp
import numpy as np
from jax.experimental import pallas as pl
from jax.experimental.pallas import tpu as pltpu


# ----------------------------------------------------------------------------
# Fused Pallas kernel: K FlowSteps + affine coupling + logdet + prior reduction
# ----------------------------------------------------------------------------

def make_flownet_kernel(img_w):
    """Build the fused kernel; `img_w` (post-squeeze image width) is static and
    defines the 9 tap shifts of the 3x3 'same' convolutions."""
    # tap index k = kh*3 + kw  (same ordering as the host-side weight reshape
    # and boundary masks); source lane for output lane p is p + dh*W + dw.
    shifts = [(kh - 1) * img_w + (kw - 1) for kh in range(3) for kw in range(3)]

    def kernel(x_ref, mask_ref, seg_ref,
               A_ref, av_ref,
               w1_ref, b1_ref, w2_ref, b2_ref,
               w3s_ref, b3s_ref, w3c_ref, b3c_ref,
               z_ref, stats_ref, slab_ref):
        f32 = jnp.float32
        bf16 = jnp.bfloat16
        K = A_ref.shape[0]              # number of FlowSteps
        C = A_ref.shape[1]              # channels after squeeze
        Cc = C // 2
        hidden = w1_ref.shape[1]
        R = x_ref.shape[1]              # TB * H * W  (lane axis)
        seg = seg_ref[...]              # (R, SEG_W) 0/1 per-image segment matrix

        def im2col(x, cin):
            # x: (cin, R) f32.  Fill slab_ref[:9*cin] with the 9 shifted,
            # boundary-masked copies (bf16) and return that view.  Rolls go to
            # the XLU, mask multiplies to the VPU; the MXU only sees one
            # (Cout, 9*cin) @ (9*cin, R) matmul afterwards.
            for k in range(9):
                d = shifts[k]
                if d == 0:
                    xs = x                                   # center tap: no shift, mask==1
                else:
                    xs = pltpu.roll(x, shift=(-d) % R, axis=1)
                    xs = xs * mask_ref[k:k + 1, :]           # zero invalid / cross-image lanes
                slab_ref[k * cin:(k + 1) * cin, :] = xs.astype(bf16)
            return slab_ref[:9 * cin, :]

        z = x_ref[...]                                       # (C, R) f32
        ld = jnp.zeros((1, seg.shape[1]), f32)

        for s in range(K):
            # --- ActNorm2d + InvertibleConv1x1, folded into y = A @ z + a ---
            y = jnp.dot(A_ref[s], z.astype(bf16),
                        preferred_element_type=f32) + av_ref[s]
            y1 = y[:Cc, :]                                   # sublane-tile-aligned split
            y2 = y[Cc:, :]

            # --- f(): Conv2d 3x3 (+folded ActNorm) -> ReLU ---
            slab = im2col(y1, Cc)                            # (72, R) bf16
            h = jnp.dot(w1_ref[s], slab, preferred_element_type=f32) + b1_ref[s]
            h = jnp.maximum(h, 0.0)
            # --- Conv2d 1x1 (+folded ActNorm) -> ReLU ---
            h = jnp.dot(w2_ref[s], h.astype(bf16),
                        preferred_element_type=f32) + b2_ref[s]
            h = jnp.maximum(h, 0.0)
            # --- Conv2dZeros 3x3 (logscale folded), 'cross'-split shift/scale ---
            slab = im2col(h, hidden)                         # (288, R) bf16, shared by both
            shift = jnp.dot(w3s_ref[s], slab, preferred_element_type=f32) + b3s_ref[s]
            spre = jnp.dot(w3c_ref[s], slab, preferred_element_type=f32) + b3c_ref[s] + 2.0

            # scale = sigmoid(spre); one exp + one log on the EUP, approx recip.
            t = jnp.exp(-jnp.abs(spre))
            inv = pl.reciprocal(1.0 + t, approx=True)
            scale = jnp.where(spre >= 0.0, inv, t * inv)
            log_scale = jnp.minimum(spre, 0.0) - jnp.log(1.0 + t)   # stable, f32

            z2 = (y2 + shift) * scale

            # per-image sum(log scale): channel-reduce then tiny f32 seg matmul
            ls_col = jnp.sum(log_scale, axis=0, keepdims=True)       # (1, R)
            ld = ld + jnp.dot(ls_col, seg, preferred_element_type=f32)

            z = jnp.concatenate([y1, z2], axis=0)

        # --- Gaussian prior data term: -0.5 * sum(z^2) per image (f32) ---
        sq_col = jnp.sum(z * z, axis=0, keepdims=True)                # (1, R)
        lp = -0.5 * jnp.dot(sq_col, seg, preferred_element_type=f32)  # (1, SEG_W)

        z_ref[...] = z
        stats_ref[0, :, :] = jnp.concatenate([ld, lp], axis=0)        # lane-dense store

    return kernel


# ----------------------------------------------------------------------------
# Host-side glue: squeeze, masks/segments, parameter folding
# ----------------------------------------------------------------------------

def squeeze2d_nchw(x):
    # modules.SqueezeLayer(factor=2) forward (pure reshape, no logdet change).
    B, C, H, W = x.shape
    x = x.reshape(B, C, H // 2, 2, W // 2, 2)
    x = jnp.transpose(x, (0, 1, 3, 5, 2, 4))
    return x.reshape(B, C * 4, H // 2, W // 2)


def build_tap_masks(H, W, TB):
    # mask[k, p] = 1 iff output position p has an in-bounds (dh,dw) source
    # inside its own image; zeroes both the zero-padding taps AND any roll
    # wrap-around between adjacent images packed into the same lane block.
    HW = H * W
    m = np.zeros((9, HW), np.float32)
    for kh in range(3):
        for kw in range(3):
            k = kh * 3 + kw
            dh, dw = kh - 1, kw - 1
            for y in range(H):
                for x in range(W):
                    if 0 <= y + dh < H and 0 <= x + dw < W:
                        m[k, y * W + x] = 1.0
    return jnp.asarray(np.tile(m, (1, TB)))        # (9, TB*HW)


def build_segment_matrix(HW, TB, seg_w):
    # (R, seg_w) 0/1 matrix; column i selects image i's pixels.  Padded to a
    # lane-dense width so the ld/lp outputs are full-width unmasked stores.
    seg = np.zeros((TB * HW, seg_w), np.float32)
    for i in range(TB):
        seg[i * HW:(i + 1) * HW, i] = 1.0
    return jnp.asarray(seg)


def fold_step_params(p):
    """Fold ActNorm / Conv2dZeros exp() factors into weights, reshape the 3x3
    convs to im2col (Cout, 9*Cin) form, and cast MXU operands to bf16."""
    bf16 = jnp.bfloat16
    C = p["inv_w"].shape[0]
    Cc = C // 2
    hidden = p["w1"].shape[0]

    # ActNorm2d + InvertibleConv1x1 (column form): z' = A @ z + a with
    #   A = W @ diag(exp(logs)),  a = W @ (bias * exp(logs)).
    s0 = jnp.exp(p["an_logs"])
    W = p["inv_w"]
    A = W * s0[None, :]
    a = (p["an_bias"] * s0) @ W.T
    out = {"A": A.astype(bf16), "a": a[:, None]}

    # f(): Conv2d 3x3 (no conv bias) + ActNorm -> fold scale into weight/bias,
    # im2col layout: column index = (kh*3 + kw)*Cin + cin.
    s1 = jnp.exp(p["an1_logs"])
    w1e = p["w1"] * s1[:, None, None, None]                    # (hidden, Cc, 3, 3)
    out["w1"] = jnp.transpose(w1e, (0, 2, 3, 1)).reshape(hidden, 9 * Cc).astype(bf16)
    out["b1"] = (p["an1_bias"] * s1)[:, None]
    # Conv2d 1x1 (no conv bias) + ActNorm.
    s2 = jnp.exp(p["an2_logs"])
    out["w2"] = (p["w2"][:, :, 0, 0] * s2[:, None]).astype(bf16)
    out["b2"] = (p["an2_bias"] * s2)[:, None]
    # Conv2dZeros 3x3: out = (conv(x) + b) * exp(3*logs); 'cross' split:
    # even output channels -> shift, odd -> scale (pre-sigmoid).
    s3 = jnp.exp(p["logs3"] * 3.0)
    w3e = p["w3"] * s3[:, None, None, None]                    # (C, hidden, 3, 3)
    b3e = p["b3"] * s3
    w3t = jnp.transpose(w3e, (0, 2, 3, 1)).reshape(C, 9 * hidden)
    out["w3s"] = w3t[0::2].astype(bf16)
    out["b3s"] = b3e[0::2][:, None]
    out["w3c"] = w3t[1::2].astype(bf16)
    out["b3c"] = b3e[1::2][:, None]

    # data-independent logdet per pixel: sum(actnorm logs) + log|det W|
    dlog = jnp.sum(p["an_logs"]) + jnp.linalg.slogdet(W)[1]
    return out, dlog


def flownet_v2_forward(x_nchw, params_list):
    B, C0, H0, W0 = x_nchw.shape
    zsq = squeeze2d_nchw(x_nchw)                  # FlowNetV2 SqueezeLayer
    _, C, H, W = zsq.shape
    Cc, HW = C // 2, H * W
    hidden = params_list[0]["w1"].shape[0]

    # Lane-block sizing: target ~1024 lanes per grid step; batch folds into the
    # lane axis (TB images / block) and the grid runs over batch blocks.
    TARGET_R = 1024
    TB = min(B, max(1, TARGET_R // HW))
    while B % TB:
        TB -= 1
    R = TB * HW
    num_blocks = B // TB
    SEG_W = max(128, ((TB + 127) // 128) * 128)   # lane-dense stats width

    # channels-on-sublanes layout: (C, B*HW); lane r = b*HW + y*W + x
    # TODO(synk): for very large batches the host-side transpose to/from this
    # layout is an extra HBM pass; it could be folded into the kernel by
    # consuming (TB, C, H, W) blocks and rearranging in VMEM.
    x_cols = jnp.transpose(zsq, (1, 0, 2, 3)).reshape(C, B * HW)

    masks = build_tap_masks(H, W, TB)             # (9, R)  0/1 conv boundary masks
    seg = build_segment_matrix(HW, TB, SEG_W)     # (R, SEG_W) 0/1 image segments

    folded = []
    dlog_const = 0.0
    for p in params_list:
        fp, dl = fold_step_params(p)
        folded.append(fp)
        dlog_const = dlog_const + dl
    stk = lambda k: jnp.stack([fp[k] for fp in folded])
    args = [x_cols, masks, seg,
            stk("A"), stk("a"),
            stk("w1"), stk("b1"), stk("w2"), stk("b2"),
            stk("w3s"), stk("b3s"), stk("w3c"), stk("b3c")]

    def const_spec(shape):
        return pl.BlockSpec(shape, lambda b: (0,) * len(shape))

    in_specs = [pl.BlockSpec((C, R), lambda b: (0, b))]
    in_specs += [const_spec(tuple(a.shape)) for a in args[1:]]
    out_specs = (pl.BlockSpec((C, R), lambda b: (0, b)),
                 pl.BlockSpec((1, 2, SEG_W), lambda b: (b, 0, 0)))
    out_shape = (jax.ShapeDtypeStruct((C, B * HW), jnp.float32),
                 jax.ShapeDtypeStruct((num_blocks, 2, SEG_W), jnp.float32))

    z_cols, stats = pl.pallas_call(
        make_flownet_kernel(W),
        out_shape=out_shape,
        grid=(num_blocks,),
        in_specs=in_specs,
        out_specs=out_specs,
        scratch_shapes=[pltpu.VMEM((9 * hidden, R), jnp.bfloat16)],  # im2col slab
        compiler_params=pltpu.CompilerParams(
            dimension_semantics=("parallel",)),
    )(*args)

    ld_data = stats[:, 0, :TB].reshape(B)
    lp_data = stats[:, 1, :TB].reshape(B)
    logdet = ld_data + dlog_const * (H * W)
    prior_log_p = lp_data - 0.5 * math.log(2.0 * math.pi) * (C * H * W)
    nll = -(logdet + prior_log_p)
    bpd = nll / math.log(2.0) / (C0 * H0 * W0)

    z_nchw = jnp.transpose(z_cols.reshape(C, B, H, W), (1, 0, 2, 3))
    return {"z": z_nchw, "logdet": logdet, "prior_log_p": prior_log_p,
            "nll": nll, "bpd": bpd, "l_zs": [], "l_logpz": [], "y_logits": None}


# ----------------------------------------------------------------------------
# Parameters and a plain-JAX (XLA) reference of the torch forward pass
# ----------------------------------------------------------------------------

def init_flowstep_params(key, C, hidden):
    Cc = C // 2
    ks = jax.random.split(key, 12)
    p = {}
    # TODO(synk): ActNorm2d uses data-dependent init in torch; ActNorm params
    # here are treated as already-initialized (inited=True) deterministic values.
    p["an_bias"] = 0.1 * jax.random.normal(ks[0], (C,), jnp.float32)
    p["an_logs"] = 0.05 * jax.random.normal(ks[1], (C,), jnp.float32)
    q, _ = jnp.linalg.qr(jax.random.normal(ks[2], (C, C), jnp.float32))
    p["inv_w"] = q                                           # orthogonal init
    p["w1"] = 0.05 * jax.random.normal(ks[3], (hidden, Cc, 3, 3), jnp.float32)
    p["an1_bias"] = 0.1 * jax.random.normal(ks[4], (hidden,), jnp.float32)
    p["an1_logs"] = 0.05 * jax.random.normal(ks[5], (hidden,), jnp.float32)
    p["w2"] = 0.05 * jax.random.normal(ks[6], (hidden, hidden, 1, 1), jnp.float32)
    p["an2_bias"] = 0.1 * jax.random.normal(ks[7], (hidden,), jnp.float32)
    p["an2_logs"] = 0.05 * jax.random.normal(ks[8], (hidden,), jnp.float32)
    # Conv2dZeros is zero-init in torch; small nonzero values keep the kernel honest.
    p["w3"] = 0.02 * jax.random.normal(ks[9], (C, hidden, 3, 3), jnp.float32)
    p["b3"] = 0.02 * jax.random.normal(ks[10], (C,), jnp.float32)
    p["logs3"] = 0.02 * jax.random.normal(ks[11], (C,), jnp.float32)
    return p


def _conv_nchw(x, w, pad):
    return jax.lax.conv_general_dilated(
        x, w, window_strides=(1, 1), padding=((pad, pad), (pad, pad)),
        dimension_numbers=("NCHW", "OIHW", "NCHW"))


def flownet_v2_reference(x_nchw, params_list):
    """Independent plain-JAX mirror of the PyTorch forward, used as self-check."""
    B, C0, H0, W0 = x_nchw.shape
    z = squeeze2d_nchw(x_nchw)
    logdet = jnp.zeros((B,), jnp.float32)
    for p in params_list:
        C, H, W = z.shape[1], z.shape[2], z.shape[3]
        Cc = C // 2
        z = (z + p["an_bias"][None, :, None, None]) \
            * jnp.exp(p["an_logs"])[None, :, None, None]
        logdet = logdet + jnp.sum(p["an_logs"]) * (H * W)
        z = jnp.einsum("oc,bchw->bohw", p["inv_w"], z)
        logdet = logdet + jnp.linalg.slogdet(p["inv_w"])[1] * (H * W)
        z1, z2 = z[:, :Cc], z[:, Cc:]
        h = _conv_nchw(z1, p["w1"], 1)
        h = (h + p["an1_bias"][None, :, None, None]) \
            * jnp.exp(p["an1_logs"])[None, :, None, None]
        h = jnp.maximum(h, 0.0)
        h = _conv_nchw(h, p["w2"], 0)
        h = (h + p["an2_bias"][None, :, None, None]) \
            * jnp.exp(p["an2_logs"])[None, :, None, None]
        h = jnp.maximum(h, 0.0)
        h = _conv_nchw(h, p["w3"], 1) + p["b3"][None, :, None, None]
        h = h * jnp.exp(p["logs3"] * 3.0)[None, :, None, None]
        shift, scale = h[:, 0::2], jax.nn.sigmoid(h[:, 1::2] + 2.0)
        z2 = (z2 + shift) * scale
        logdet = logdet + jnp.sum(jnp.log(scale), axis=(1, 2, 3))
        z = jnp.concatenate([z1, z2], axis=1)
    prior_log_p = jnp.sum(-0.5 * z * z - 0.5 * math.log(2.0 * math.pi),
                          axis=(1, 2, 3))
    nll = -(logdet + prior_log_p)
    bpd = nll / math.log(2.0) / (C0 * H0 * W0)
    return {"z": z, "logdet": logdet, "prior_log_p": prior_log_p,
            "nll": nll, "bpd": bpd}


# ----------------------------------------------------------------------------

if __name__ == "__main__":
    # image_shape = (H, W, C) = (16, 16, 4); hidden_channels=32; K=2; L=1
    B, C0, H0, W0 = 2, 4, 16, 16
    hidden_channels, K = 32, 2
    C_sq = C0 * 4                                  # channels after squeeze

    key = jax.random.PRNGKey(0)
    kx, kp = jax.random.split(key)
    x = jax.random.normal(kx, (B, C0, H0, W0), jnp.float32)
    step_keys = jax.random.split(kp, K)
    params_list = [init_flowstep_params(step_keys[i], C_sq, hidden_channels)
                   for i in range(K)]

    out = jax.jit(flownet_v2_forward)(x, params_list)
    jax.block_until_ready(out["z"])
    jax.block_until_ready(out["logdet"])
    jax.block_until_ready(out["nll"])
    jax.block_until_ready(out["bpd"])

    # numerical self-check against the plain-JAX reference (loose tolerances:
    # kernel uses bf16 MXU operands, reference uses default-precision XLA ops).
    ref = jax.jit(flownet_v2_reference)(x, params_list)
    assert jnp.allclose(out["z"], ref["z"], rtol=5e-2, atol=5e-2)
    assert jnp.allclose(out["logdet"], ref["logdet"], rtol=2e-2, atol=1.0)
    assert jnp.allclose(out["prior_log_p"], ref["prior_log_p"], rtol=2e-2, atol=1.0)
    assert jnp.allclose(out["nll"], ref["nll"], rtol=2e-2, atol=1.0)
    assert jnp.allclose(out["bpd"], ref["bpd"], rtol=2e-2, atol=5e-2)

    print("KERNEL_OK")
</pallas_src>

<mosaic_0001>
module attributes {stable_mosaic.version = 11 : i64} {
  func.func @kernel(%arg0: i32, %arg1: memref<16x128xf32, #tpu.memory_space<vmem>>, %arg2: memref<9x128xf32, #tpu.memory_space<vmem>>, %arg3: memref<128x128xf32, #tpu.memory_space<vmem>>, %arg4: memref<2x16x16xbf16, #tpu.memory_space<vmem>>, %arg5: memref<2x16x1xf32, #tpu.memory_space<vmem>>, %arg6: memref<2x32x72xbf16, #tpu.memory_space<vmem>>, %arg7: memref<2x32x1xf32, #tpu.memory_space<vmem>>, %arg8: memref<2x32x32xbf16, #tpu.memory_space<vmem>>, %arg9: memref<2x32x1xf32, #tpu.memory_space<vmem>>, %arg10: memref<2x8x288xbf16, #tpu.memory_space<vmem>>, %arg11: memref<2x8x1xf32, #tpu.memory_space<vmem>>, %arg12: memref<2x8x288xbf16, #tpu.memory_space<vmem>>, %arg13: memref<2x8x1xf32, #tpu.memory_space<vmem>>, %arg14: memref<16x128xf32, #tpu.memory_space<vmem>>, %arg15: memref<1x2x128xf32, #tpu.memory_space<vmem>>, %arg16: memref<288x128xbf16, #tpu.memory_space<vmem>>) attributes {dimension_semantics = [#tpu.dimension_semantics<parallel>], iteration_bounds = array<i64: 1>, scalar_prefetch = 0 : i64, scratch_operands = 1 : i64, tpu.core_type = #tpu.core_type<tc>, window_params = [{transform_indices = @transform_0, window_bounds = array<i64: 16, 128>}, {pipeline_mode = #tpu.pipeline_mode<synchronous>, transform_indices = @transform_1, window_bounds = array<i64: 9, 128>}, {pipeline_mode = #tpu.pipeline_mode<synchronous>, transform_indices = @transform_2, window_bounds = array<i64: 128, 128>}, {pipeline_mode = #tpu.pipeline_mode<synchronous>, transform_indices = @transform_3, window_bounds = array<i64: 2, 16, 16>}, {pipeline_mode = #tpu.pipeline_mode<synchronous>, transform_indices = @transform_4, window_bounds = array<i64: 2, 16, 1>}, {pipeline_mode = #tpu.pipeline_mode<synchronous>, transform_indices = @transform_5, window_bounds = array<i64: 2, 32, 72>}, {pipeline_mode = #tpu.pipeline_mode<synchronous>, transform_indices = @transform_6, window_bounds = array<i64: 2, 32, 1>}, {pipeline_mode = #tpu.pipeline_mode<synchronous>, transform_indices = @transform_7, window_bounds = array<i64: 2, 32, 32>}, {pipeline_mode = #tpu.pipeline_mode<synchronous>, transform_indices = @transform_8, window_bounds = array<i64: 2, 32, 1>}, {pipeline_mode = #tpu.pipeline_mode<synchronous>, transform_indices = @transform_9, window_bounds = array<i64: 2, 8, 288>}, {pipeline_mode = #tpu.pipeline_mode<synchronous>, transform_indices = @transform_10, window_bounds = array<i64: 2, 8, 1>}, {pipeline_mode = #tpu.pipeline_mode<synchronous>, transform_indices = @transform_11, window_bounds = array<i64: 2, 8, 288>}, {pipeline_mode = #tpu.pipeline_mode<synchronous>, transform_indices = @transform_12, window_bounds = array<i64: 2, 8, 1>}, {transform_indices = @transform_13, window_bounds = array<i64: 16, 128>}, {transform_indices = @transform_14, window_bounds = array<i64: 1, 2, 128>}]} {
    %c0 = arith.constant 0 : index
    %c0_0 = arith.constant 0 : index
    %0 = vector.load %arg3[%c0, %c0_0] : memref<128x128xf32, #tpu.memory_space<vmem>>, vector<128x128xf32>
    %c0_1 = arith.constant 0 : index
    %c0_2 = arith.constant 0 : index
    %1 = vector.load %arg1[%c0_1, %c0_2] : memref<16x128xf32, #tpu.memory_space<vmem>>, vector<16x128xf32>
    %cst = arith.constant 0.000000e+00 : f32
    %2 = vector.broadcast %cst : f32 to vector<1x128xf32>
    %c0_3 = arith.constant 0 : index
    %c0_4 = arith.constant 0 : index
    %c0_5 = arith.constant 0 : index
    %3 = vector.load %arg4[%c0_3, %c0_4, %c0_5] : memref<2x16x16xbf16, #tpu.memory_space<vmem>>, vector<1x16x16xbf16>
    %4 = vector.shape_cast %3 : vector<1x16x16xbf16> to vector<16x16xbf16>
    %5 = arith.truncf %1 : vector<16x128xf32> to vector<16x128xbf16>
    %cst_6 = arith.constant dense<0.000000e+00> : vector<16x128xf32>
    %6 = tpu.matmul %4, %5, %cst_6 {dimension_numbers = #tpu.dot_dimension_numbers<[1], [0], [0], [1], [0, 0, 1, 1], [], []>} : vector<16x16xbf16>, vector<16x128xbf16>, vector<16x128xf32> -> vector<16x128xf32>
    %c0_7 = arith.constant 0 : index
    %c0_8 = arith.constant 0 : index
    %c0_9 = arith.constant 0 : index
    %7 = vector.load %arg5[%c0_7, %c0_8, %c0_9] : memref<2x16x1xf32, #tpu.memory_space<vmem>>, vector<1x16x1xf32>
    %8 = vector.shape_cast %7 : vector<1x16x1xf32> to vector<16x1xf32>
    %9 = vector.broadcast %8 : vector<16x1xf32> to vector<16x128xf32>
    %10 = arith.addf %6, %9 : vector<16x128xf32>
    %11 = vector.extract_strided_slice %10 {offsets = [0, 0], sizes = [8, 128], strides = [1, 1]} : vector<16x128xf32> to vector<8x128xf32>
    %12 = vector.extract_strided_slice %10 {offsets = [8, 0], sizes = [8, 128], strides = [1, 1]} : vector<16x128xf32> to vector<8x128xf32>
    %c9_i32 = arith.constant 9 : i32
    %13 = tpu.dynamic_rotate %11 by %c9_i32 dim 1 : vector<8x128xf32>, i32 -> vector<8x128xf32>
    %c0_10 = arith.constant 0 : index
    %c0_11 = arith.constant 0 : index
    %14 = vector.load %arg2[%c0_10, %c0_11] : memref<9x128xf32, #tpu.memory_space<vmem>>, vector<1x128xf32>
    %15 = vector.broadcast %14 : vector<1x128xf32> to vector<8x128xf32>
    %16 = arith.mulf %13, %15 : vector<8x128xf32>
    %17 = arith.truncf %16 : vector<8x128xf32> to vector<8x128xbf16>
    %c0_12 = arith.constant 0 : index
    %c0_13 = arith.constant 0 : index
    %18 = vector.load %arg16[%c0_12, %c0_13] : memref<288x128xbf16, #tpu.memory_space<vmem>>, vector<8x128xbf16>
    tpu.vector_store %arg16[%c0_12, %c0_13], %17 {strides = array<i32>} : memref<288x128xbf16, #tpu.memory_space<vmem>>, vector<8x128xbf16>,
    %c8_i32 = arith.constant 8 : i32
    %19 = tpu.dynamic_rotate %11 by %c8_i32 dim 1 : vector<8x128xf32>, i32 -> vector<8x128xf32>
    %c1 = arith.constant 1 : index
    %c0_14 = arith.constant 0 : index
    %20 = vector.load %arg2[%c1, %c0_14] : memref<9x128xf32, #tpu.memory_space<vmem>>, vector<1x128xf32>
    %21 = vector.broadcast %20 : vector<1x128xf32> to vector<8x128xf32>
    %22 = arith.mulf %19, %21 : vector<8x128xf32>
    %23 = arith.truncf %22 : vector<8x128xf32> to vector<8x128xbf16>
    %c8 = arith.constant 8 : index
    %c0_15 = arith.constant 0 : index
    %24 = vector.load %arg16[%c8, %c0_15] : memref<288x128xbf16, #tpu.memory_space<vmem>>, vector<8x128xbf16>
    tpu.vector_store %arg16[%c8, %c0_15], %23 {strides = array<i32>} : memref<288x128xbf16, #tpu.memory_space<vmem>>, vector<8x128xbf16>,
    %c7_i32 = arith.constant 7 : i32
    %25 = tpu.dynamic_rotate %11 by %c7_i32 dim 1 : vector<8x128xf32>, i32 -> vector<8x128xf32>
    %c2 = arith.constant 2 : index
    %c0_16 = arith.constant 0 : index
    %26 = vector.load %arg2[%c2, %c0_16] : memref<9x128xf32, #tpu.memory_space<vmem>>, vector<1x128xf32>
    %27 = vector.broadcast %26 : vector<1x128xf32> to vector<8x128xf32>
    %28 = arith.mulf %25, %27 : vector<8x128xf32>
    %29 = arith.truncf %28 : vector<8x128xf32> to vector<8x128xbf16>
    %c16 = arith.constant 16 : index
    %c0_17 = arith.constant 0 : index
    %30 = vector.load %arg16[%c16, %c0_17] : memref<288x128xbf16, #tpu.memory_space<vmem>>, vector<8x128xbf16>
    tpu.vector_store %arg16[%c16, %c0_17], %29 {strides = array<i32>} : memref<288x128xbf16, #tpu.memory_space<vmem>>, vector<8x128xbf16>,
    %c1_i32 = arith.constant 1 : i32
    %31 = tpu.dynamic_rotate %11 by %c1_i32 dim 1 : vector<8x128xf32>, i32 -> vector<8x128xf32>
    %c3 = arith.constant 3 : index
    %c0_18 = arith.constant 0 : index
    %32 = vector.load %arg2[%c3, %c0_18] : memref<9x128xf32, #tpu.memory_space<vmem>>, vector<1x128xf32>
    %33 = vector.broadcast %32 : vector<1x128xf32> to vector<8x128xf32>
    %34 = arith.mulf %31, %33 : vector<8x128xf32>
    %35 = arith.truncf %34 : vector<8x128xf32> to vector<8x128xbf16>
    %c24 = arith.constant 24 : index
    %c0_19 = arith.constant 0 : index
    %36 = vector.load %arg16[%c24, %c0_19] : memref<288x128xbf16, #tpu.memory_space<vmem>>, vector<8x128xbf16>
    tpu.vector_store %arg16[%c24, %c0_19], %35 {strides = array<i32>} : memref<288x128xbf16, #tpu.memory_space<vmem>>, vector<8x128xbf16>,
    %37 = arith.truncf %11 : vector<8x128xf32> to vector<8x128xbf16>
    %c32 = arith.constant 32 : index
    %c0_20 = arith.constant 0 : index
    %38 = vector.load %arg16[%c32, %c0_20] : memref<288x128xbf16, #tpu.memory_space<vmem>>, vector<8x128xbf16>
    tpu.vector_store %arg16[%c32, %c0_20], %37 {strides = array<i32>} : memref<288x128xbf16, #tpu.memory_space<vmem>>, vector<8x128xbf16>,
    %c127_i32 = arith.constant 127 : i32
    %39 = tpu.dynamic_rotate %11 by %c127_i32 dim 1 : vector<8x128xf32>, i32 -> vector<8x128xf32>
    %c5 = arith.constant 5 : index
    %c0_21 = arith.constant 0 : index
    %40 = vector.load %arg2[%c5, %c0_21] : memref<9x128xf32, #tpu.memory_space<vmem>>, vector<1x128xf32>
    %41 = vector.broadcast %40 : vector<1x128xf32> to vector<8x128xf32>
    %42 = arith.mulf %39, %41 : vector<8x128xf32>
    %43 = arith.truncf %42 : vector<8x128xf32> to vector<8x128xbf16>
    %c40 = arith.constant 40 : index
    %c0_22 = arith.constant 0 : index
    %44 = vector.load %arg16[%c40, %c0_22] : memref<288x128xbf16, #tpu.memory_space<vmem>>, vector<8x128xbf16>
    tpu.vector_store %arg16[%c40, %c0_22], %43 {strides = array<i32>} : memref<288x128xbf16, #tpu.memory_space<vmem>>, vector<8x128xbf16>,
    %c121_i32 = arith.constant 121 : i32
    %45 = tpu.dynamic_rotate %11 by %c121_i32 dim 1 : vector<8x128xf32>, i32 -> vector<8x128xf32>
    %c6 = arith.constant 6 : index
    %c0_23 = arith.constant 0 : index
    %46 = vector.load %arg2[%c6, %c0_23] : memref<9x128xf32, #tpu.memory_space<vmem>>, vector<1x128xf32>
    %47 = vector.broadcast %46 : vector<1x128xf32> to vector<8x128xf32>
    %48 = arith.mulf %45, %47 : vector<8x128xf32>
    %49 = arith.truncf %48 : vector<8x128xf32> to vector<8x128xbf16>
    %c48 = arith.constant 48 : index
    %c0_24 = arith.constant 0 : index
    %50 = vector.load %arg16[%c48, %c0_24] : memref<288x128xbf16, #tpu.memory_space<vmem>>, vector<8x128xbf16>
    tpu.vector_store %arg16[%c48, %c0_24], %49 {strides = array<i32>} : memref<288x128xbf16, #tpu.memory_space<vmem>>, vector<8x128xbf16>,
    %c120_i32 = arith.constant 120 : i32
    %51 = tpu.dynamic_rotate %11 by %c120_i32 dim 1 : vector<8x128xf32>, i32 -> vector<8x128xf32>
    %c7 = arith.constant 7 : index
    %c0_25 = arith.constant 0 : index
    %52 = vector.load %arg2[%c7, %c0_25] : memref<9x128xf32, #tpu.memory_space<vmem>>, vector<1x128xf32>
    %53 = vector.broadcast %52 : vector<1x128xf32> to vector<8x128xf32>
    %54 = arith.mulf %51, %53 : vector<8x128xf32>
    %55 = arith.truncf %54 : vector<8x128xf32> to vector<8x128xbf16>
    %c56 = arith.constant 56 : index
    %c0_26 = arith.constant 0 : index
    %56 = vector.load %arg16[%c56, %c0_26] : memref<288x128xbf16, #tpu.memory_space<vmem>>, vector<8x128xbf16>
    tpu.vector_store %arg16[%c56, %c0_26], %55 {strides = array<i32>} : memref<288x128xbf16, #tpu.memory_space<vmem>>, vector<8x128xbf16>,
    %c119_i32 = arith.constant 119 : i32
    %57 = tpu.dynamic_rotate %11 by %c119_i32 dim 1 : vector<8x128xf32>, i32 -> vector<8x128xf32>
    %c8_27 = arith.constant 8 : index
    %c0_28 = arith.constant 0 : index
    %58 = vector.load %arg2[%c8_27, %c0_28] : memref<9x128xf32, #tpu.memory_space<vmem>>, vector<1x128xf32>
    %59 = vector.broadcast %58 : vector<1x128xf32> to vector<8x128xf32>
    %60 = arith.mulf %57, %59 : vector<8x128xf32>
    %61 = arith.truncf %60 : vector<8x128xf32> to vector<8x128xbf16>
    %c64 = arith.constant 64 : index
    %c0_29 = arith.constant 0 : index
    %62 = vector.load %arg16[%c64, %c0_29] : memref<288x128xbf16, #tpu.memory_space<vmem>>, vector<8x128xbf16>
    tpu.vector_store %arg16[%c64, %c0_29], %61 {strides = array<i32>} : memref<288x128xbf16, #tpu.memory_space<vmem>>, vector<8x128xbf16>,
    %c0_30 = arith.constant 0 : index
    %c0_31 = arith.constant 0 : index
    %63 = vector.load %arg16[%c0_30, %c0_31] : memref<288x128xbf16, #tpu.memory_space<vmem>>, vector<72x128xbf16>
    %c0_32 = arith.constant 0 : index
    %c0_33 = arith.constant 0 : index
    %c0_34 = arith.constant 0 : index
    %64 = vector.load %arg6[%c0_32, %c0_33, %c0_34] : memref<2x32x72xbf16, #tpu.memory_space<vmem>>, vector<1x32x72xbf16>
    %65 = vector.shape_cast %64 : vector<1x32x72xbf16> to vector<32x72xbf16>
    %cst_35 = arith.constant dense<0.000000e+00> : vector<32x128xf32>
    %66 = tpu.matmul %65, %63, %cst_35 {dimension_numbers = #tpu.dot_dimension_numbers<[1], [0], [0], [1], [0, 0, 1, 1], [], []>} : vector<32x72xbf16>, vector<72x128xbf16>, vector<32x128xf32> -> vector<32x128xf32>
    %c0_36 = arith.constant 0 : index
    %c0_37 = arith.constant 0 : index
    %c0_38 = arith.constant 0 : index
    %67 = vector.load %arg7[%c0_36, %c0_37, %c0_38] : memref<2x32x1xf32, #tpu.memory_space<vmem>>, vector<1x32x1xf32>
    %68 = vector.shape_cast %67 : vector<1x32x1xf32> to vector<32x1xf32>
    %69 = vector.broadcast %68 : vector<32x1xf32> to vector<32x128xf32>
    %70 = arith.addf %66, %69 : vector<32x128xf32>
    %cst_39 = arith.constant 0.000000e+00 : f32
    %71 = vector.broadcast %cst_39 : f32 to vector<32x128xf32>
    %72 = arith.maximumf %70, %71 : vector<32x128xf32>
    %c0_40 = arith.constant 0 : index
    %c0_41 = arith.constant 0 : index
    %c0_42 = arith.constant 0 : index
    %73 = vector.load %arg8[%c0_40, %c0_41, %c0_42] : memref<2x32x32xbf16, #tpu.memory_space<vmem>>, vector<1x32x32xbf16>
    %74 = vector.shape_cast %73 : vector<1x32x32xbf16> to vector<32x32xbf16>
    %75 = arith.truncf %72 : vector<32x128xf32> to vector<32x128xbf16>
    %cst_43 = arith.constant dense<0.000000e+00> : vector<32x128xf32>
    %76 = tpu.matmul %74, %75, %cst_43 {dimension_numbers = #tpu.dot_dimension_numbers<[1], [0], [0], [1], [0, 0, 1, 1], [], []>} : vector<32x32xbf16>, vector<32x128xbf16>, vector<32x128xf32> -> vector<32x128xf32>
    %c0_44 = arith.constant 0 : index
    %c0_45 = arith.constant 0 : index
    %c0_46 = arith.constant 0 : index
    %77 = vector.load %arg9[%c0_44, %c0_45, %c0_46] : memref<2x32x1xf32, #tpu.memory_space<vmem>>, vector<1x32x1xf32>
    %78 = vector.shape_cast %77 : vector<1x32x1xf32> to vector<32x1xf32>
    %79 = vector.broadcast %78 : vector<32x1xf32> to vector<32x128xf32>
    %80 = arith.addf %76, %79 : vector<32x128xf32>
    %cst_47 = arith.constant 0.000000e+00 : f32
    %81 = vector.broadcast %cst_47 : f32 to vector<32x128xf32>
    %82 = arith.maximumf %80, %81 : vector<32x128xf32>
    %c9_i32_48 = arith.constant 9 : i32
    %83 = tpu.dynamic_rotate %82 by %c9_i32_48 dim 1 : vector<32x128xf32>, i32 -> vector<32x128xf32>
    %c0_49 = arith.constant 0 : index
    %c0_50 = arith.constant 0 : index
    %84 = vector.load %arg2[%c0_49, %c0_50] : memref<9x128xf32, #tpu.memory_space<vmem>>, vector<1x128xf32>
    %85 = vector.broadcast %84 : vector<1x128xf32> to vector<32x128xf32>
    %86 = arith.mulf %83, %85 : vector<32x128xf32>
    %87 = arith.truncf %86 : vector<32x128xf32> to vector<32x128xbf16>
    %c0_51 = arith.constant 0 : index
    %c0_52 = arith.constant 0 : index
    %88 = vector.load %arg16[%c0_51, %c0_52] : memref<288x128xbf16, #tpu.memory_space<vmem>>, vector<32x128xbf16>
    tpu.vector_store %arg16[%c0_51, %c0_52], %87 {strides = array<i32>} : memref<288x128xbf16, #tpu.memory_space<vmem>>, vector<32x128xbf16>,
    %c8_i32_53 = arith.constant 8 : i32
    %89 = tpu.dynamic_rotate %82 by %c8_i32_53 dim 1 : vector<32x128xf32>, i32 -> vector<32x128xf32>
    %c1_54 = arith.constant 1 : index
    %c0_55 = arith.constant 0 : index
    %90 = vector.load %arg2[%c1_54, %c0_55] : memref<9x128xf32, #tpu.memory_space<vmem>>, vector<1x128xf32>
    %91 = vector.broadcast %90 : vector<1x128xf32> to vector<32x128xf32>
    %92 = arith.mulf %89, %91 : vector<32x128xf32>
    %93 = arith.truncf %92 : vector<32x128xf32> to vector<32x128xbf16>
    %c32_56 = arith.constant 32 : index
    %c0_57 = arith.constant 0 : index
    %94 = vector.load %arg16[%c32_56, %c0_57] : memref<288x128xbf16, #tpu.memory_space<vmem>>, vector<32x128xbf16>
    tpu.vector_store %arg16[%c32_56, %c0_57], %93 {strides = array<i32>} : memref<288x128xbf16, #tpu.memory_space<vmem>>, vector<32x128xbf16>,
    %c7_i32_58 = arith.constant 7 : i32
    %95 = tpu.dynamic_rotate %82 by %c7_i32_58 dim 1 : vector<32x128xf32>, i32 -> vector<32x128xf32>
    %c2_59 = arith.constant 2 : index
    %c0_60 = arith.constant 0 : index
    %96 = vector.load %arg2[%c2_59, %c0_60] : memref<9x128xf32, #tpu.memory_space<vmem>>, vector<1x128xf32>
    %97 = vector.broadcast %96 : vector<1x128xf32> to vector<32x128xf32>
    %98 = arith.mulf %95, %97 : vector<32x128xf32>
    %99 = arith.truncf %98 : vector<32x128xf32> to vector<32x128xbf16>
    %c64_61 = arith.constant 64 : index
    %c0_62 = arith.constant 0 : index
    %100 = vector.load %arg16[%c64_61, %c0_62] : memref<288x128xbf16, #tpu.memory_space<vmem>>, vector<32x128xbf16>
    tpu.vector_store %arg16[%c64_61, %c0_62], %99 {strides = array<i32>} : memref<288x128xbf16, #tpu.memory_space<vmem>>, vector<32x128xbf16>,
    %c1_i32_63 = arith.constant 1 : i32
    %101 = tpu.dynamic_rotate %82 by %c1_i32_63 dim 1 : vector<32x128xf32>, i32 -> vector<32x128xf32>
    %c3_64 = arith.constant 3 : index
    %c0_65 = arith.constant 0 : index
    %102 = vector.load %arg2[%c3_64, %c0_65] : memref<9x128xf32, #tpu.memory_space<vmem>>, vector<1x128xf32>
    %103 = vector.broadcast %102 : vector<1x128xf32> to vector<32x128xf32>
    %104 = arith.mulf %101, %103 : vector<32x128xf32>
    %105 = arith.truncf %104 : vector<32x128xf32> to vector<32x128xbf16>
    %c96 = arith.constant 96 : index
    %c0_66 = arith.constant 0 : index
    %106 = vector.load %arg16[%c96, %c0_66] : memref<288x128xbf16, #tpu.memory_space<vmem>>, vector<32x128xbf16>
    tpu.vector_store %arg16[%c96, %c0_66], %105 {strides = array<i32>} : memref<288x128xbf16, #tpu.memory_space<vmem>>, vector<32x128xbf16>,
    %107 = arith.truncf %82 : vector<32x128xf32> to vector<32x128xbf16>
    %c128 = arith.constant 128 : index
    %c0_67 = arith.constant 0 : index
    %108 = vector.load %arg16[%c128, %c0_67] : memref<288x128xbf16, #tpu.memory_space<vmem>>, vector<32x128xbf16>
    tpu.vector_store %arg16[%c128, %c0_67], %107 {strides = array<i32>} : memref<288x128xbf16, #tpu.memory_space<vmem>>, vector<32x128xbf16>,
    %c127_i32_68 = arith.constant 127 : i32
    %109 = tpu.dynamic_rotate %82 by %c127_i32_68 dim 1 : vector<32x128xf32>, i32 -> vector<32x128xf32>
    %c5_69 = arith.constant 5 : index
    %c0_70 = arith.constant 0 : index
    %110 = vector.load %arg2[%c5_69, %c0_70] : memref<9x128xf32, #tpu.memory_space<vmem>>, vector<1x128xf32>
    %111 = vector.broadcast %110 : vector<1x128xf32> to vector<32x128xf32>
    %112 = arith.mulf %109, %111 : vector<32x128xf32>
    %113 = arith.truncf %112 : vector<32x128xf32> to vector<32x128xbf16>
    %c160 = arith.constant 160 : index
    %c0_71 = arith.constant 0 : index
    %114 = vector.load %arg16[%c160, %c0_71] : memref<288x128xbf16, #tpu.memory_space<vmem>>, vector<32x128xbf16>
    tpu.vector_store %arg16[%c160, %c0_71], %113 {strides = array<i32>} : memref<288x128xbf16, #tpu.memory_space<vmem>>, vector<32x128xbf16>,
    %c121_i32_72 = arith.constant 121 : i32
    %115 = tpu.dynamic_rotate %82 by %c121_i32_72 dim 1 : vector<32x128xf32>, i32 -> vector<32x128xf32>
    %c6_73 = arith.constant 6 : index
    %c0_74 = arith.constant 0 : index
    %116 = vector.load %arg2[%c6_73, %c0_74] : memref<9x128xf32, #tpu.memory_space<vmem>>, vector<1x128xf32>
    %117 = vector.broadcast %116 : vector<1x128xf32> to vector<32x128xf32>
    %118 = arith.mulf %115, %117 : vector<32x128xf32>
    %119 = arith.truncf %118 : vector<32x128xf32> to vector<32x128xbf16>
    %c192 = arith.constant 192 : index
    %c0_75 = arith.constant 0 : index
    %120 = vector.load %arg16[%c192, %c0_75] : memref<288x128xbf16, #tpu.memory_space<vmem>>, vector<32x128xbf16>
    tpu.vector_store %arg16[%c192, %c0_75], %119 {strides = array<i32>} : memref<288x128xbf16, #tpu.memory_space<vmem>>, vector<32x128xbf16>,
    %c120_i32_76 = arith.constant 120 : i32
    %121 = tpu.dynamic_rotate %82 by %c120_i32_76 dim 1 : vector<32x128xf32>, i32 -> vector<32x128xf32>
    %c7_77 = arith.constant 7 : index
    %c0_78 = arith.constant 0 : index
    %122 = vector.load %arg2[%c7_77, %c0_78] : memref<9x128xf32, #tpu.memory_space<vmem>>, vector<1x128xf32>
    %123 = vector.broadcast %122 : vector<1x128xf32> to vector<32x128xf32>
    %124 = arith.mulf %121, %123 : vector<32x128xf32>
    %125 = arith.truncf %124 : vector<32x128xf32> to vector<32x128xbf16>
    %c224 = arith.constant 224 : index
    %c0_79 = arith.constant 0 : index
    %126 = vector.load %arg16[%c224, %c0_79] : memref<288x128xbf16, #tpu.memory_space<vmem>>, vector<32x128xbf16>
    tpu.vector_store %arg16[%c224, %c0_79], %125 {strides = array<i32>} : memref<288x128xbf16, #tpu.memory_space<vmem>>, vector<32x128xbf16>,
    %c119_i32_80 = arith.constant 119 : i32
    %127 = tpu.dynamic_rotate %82 by %c119_i32_80 dim 1 : vector<32x128xf32>, i32 -> vector<32x128xf32>
    %c8_81 = arith.constant 8 : index
    %c0_82 = arith.constant 0 : index
    %128 = vector.load %arg2[%c8_81, %c0_82] : memref<9x128xf32, #tpu.memory_space<vmem>>, vector<1x128xf32>
    %129 = vector.broadcast %128 : vector<1x128xf32> to vector<32x128xf32>
    %130 = arith.mulf %127, %129 : vector<32x128xf32>
    %131 = arith.truncf %130 : vector<32x128xf32> to vector<32x128xbf16>
    %c256 = arith.constant 256 : index
    %c0_83 = arith.constant 0 : index
    %132 = vector.load %arg16[%c256, %c0_83] : memref<288x128xbf16, #tpu.memory_space<vmem>>, vector<32x128xbf16>
    tpu.vector_store %arg16[%c256, %c0_83], %131 {strides = array<i32>} : memref<288x128xbf16, #tpu.memory_space<vmem>>, vector<32x128xbf16>,
    %c0_84 = arith.constant 0 : index
    %c0_85 = arith.constant 0 : index
    %133 = vector.load %arg16[%c0_84, %c0_85] : memref<288x128xbf16, #tpu.memory_space<vmem>>, vector<288x128xbf16>
    %c0_86 = arith.constant 0 : index
    %c0_87 = arith.constant 0 : index
    %c0_88 = arith.constant 0 : index
    %134 = vector.load %arg10[%c0_86, %c0_87, %c0_88] : memref<2x8x288xbf16, #tpu.memory_space<vmem>>, vector<1x8x288xbf16>
    %135 = vector.shape_cast %134 : vector<1x8x288xbf16> to vector<8x288xbf16>
    %cst_89 = arith.constant dense<0.000000e+00> : vector<8x128xf32>
    %136 = tpu.matmul %135, %133, %cst_89 {dimension_numbers = #tpu.dot_dimension_numbers<[1], [0], [0], [1], [0, 0, 1, 1], [], []>} : vector<8x288xbf16>, vector<288x128xbf16>, vector<8x128xf32> -> vector<8x128xf32>
    %c0_90 = arith.constant 0 : index
    %c0_91 = arith.constant 0 : index
    %c0_92 = arith.constant 0 : index
    %137 = vector.load %arg11[%c0_90, %c0_91, %c0_92] : memref<2x8x1xf32, #tpu.memory_space<vmem>>, vector<1x8x1xf32>
    %138 = vector.shape_cast %137 : vector<1x8x1xf32> to vector<8x1xf32>
    %139 = vector.broadcast %138 : vector<8x1xf32> to vector<8x128xf32>
    %140 = arith.addf %136, %139 : vector<8x128xf32>
    %c0_93 = arith.constant 0 : index
    %c0_94 = arith.constant 0 : index
    %c0_95 = arith.constant 0 : index
    %141 = vector.load %arg12[%c0_93, %c0_94, %c0_95] : memref<2x8x288xbf16, #tpu.memory_space<vmem>>, vector<1x8x288xbf16>
    %142 = vector.shape_cast %141 : vector<1x8x288xbf16> to vector<8x288xbf16>
    %cst_96 = arith.constant dense<0.000000e+00> : vector<8x128xf32>
    %143 = tpu.matmul %142, %133, %cst_96 {dimension_numbers = #tpu.dot_dimension_numbers<[1], [0], [0], [1], [0, 0, 1, 1], [], []>} : vector<8x288xbf16>, vector<288x128xbf16>, vector<8x128xf32> -> vector<8x128xf32>
    %c0_97 = arith.constant 0 : index
    %c0_98 = arith.constant 0 : index
    %c0_99 = arith.constant 0 : index
    %144 = vector.load %arg13[%c0_97, %c0_98, %c0_99] : memref<2x8x1xf32, #tpu.memory_space<vmem>>, vector<1x8x1xf32>
    %145 = vector.shape_cast %144 : vector<1x8x1xf32> to vector<8x1xf32>
    %146 = vector.broadcast %145 : vector<8x1xf32> to vector<8x128xf32>
    %147 = arith.addf %143, %146 : vector<8x128xf32>
    %cst_100 = arith.constant 2.000000e+00 : f32
    %148 = vector.broadcast %cst_100 : f32 to vector<8x128xf32>
    %149 = arith.addf %147, %148 : vector<8x128xf32>
    %150 = math.absf %149 : vector<8x128xf32>
    %cst_101 = arith.constant 0.000000e+00 : f32
    %151 = vector.broadcast %cst_101 : f32 to vector<8x128xf32>
    %152 = arith.subf %151, %150 : vector<8x128xf32>
    %153 = math.exp %152 : vector<8x128xf32>
    %cst_102 = arith.constant 1.000000e+00 : f32
    %154 = vector.broadcast %cst_102 : f32 to vector<8x128xf32>
    %155 = arith.addf %154, %153 : vector<8x128xf32>
    %156 = tpu.reciprocal %155 {approx = true} : vector<8x128xf32> -> vector<8x128xf32>
    %cst_103 = arith.constant 0.000000e+00 : f32
    %157 = vector.broadcast %cst_103 : f32 to vector<8x128xf32>
    %158 = arith.cmpf oge, %149, %157 : vector<8x128xf32>
    %159 = arith.mulf %153, %156 : vector<8x128xf32>
    %160 = arith.select %158, %156, %159 : vector<8x128xi1>, vector<8x128xf32>
    %cst_104 = arith.constant 0.000000e+00 : f32
    %161 = vector.broadcast %cst_104 : f32 to vector<8x128xf32>
    %162 = arith.minimumf %149, %161 : vector<8x128xf32>
    %cst_105 = arith.constant 1.000000e+00 : f32
    %163 = vector.broadcast %cst_105 : f32 to vector<8x128xf32>
    %164 = arith.addf %163, %153 : vector<8x128xf32>
    %165 = math.log %164 : vector<8x128xf32>
    %166 = arith.subf %162, %165 : vector<8x128xf32>
    %167 = arith.addf %12, %140 : vector<8x128xf32>
    %168 = arith.mulf %167, %160 : vector<8x128xf32>
    %cst_106 = arith.constant dense<0.000000e+00> : vector<128xf32>
    %169 = vector.multi_reduction <add>, %166, %cst_106 [0] : vector<8x128xf32> to vector<128xf32>
    %170 = vector.shape_cast %169 : vector<128xf32> to vector<1x128xf32>
    %cst_107 = arith.constant dense<0.000000e+00> : vector<1x128xf32>
    %171 = tpu.matmul %170, %0, %cst_107 {dimension_numbers = #tpu.dot_dimension_numbers<[1], [0], [0], [1], [0, 0, 1, 1], [], []>} : vector<1x128xf32>, vector<128x128xf32>, vector<1x128xf32> -> vector<1x128xf32>
    %172 = arith.addf %2, %171 : vector<1x128xf32>
    %173 = tpu.concatenate %11, %168 in 0 : vector<8x128xf32>, vector<8x128xf32> -> vector<16x128xf32>
    %c1_108 = arith.constant 1 : index
    %c0_109 = arith.constant 0 : index
    %c0_110 = arith.constant 0 : index
    %174 = vector.load %arg4[%c1_108, %c0_109, %c0_110] : memref<2x16x16xbf16, #tpu.memory_space<vmem>>, vector<1x16x16xbf16>
    %175 = vector.shape_cast %174 : vector<1x16x16xbf16> to vector<16x16xbf16>
    %176 = arith.truncf %173 : vector<16x128xf32> to vector<16x128xbf16>
    %cst_111 = arith.constant dense<0.000000e+00> : vector<16x128xf32>
    %177 = tpu.matmul %175, %176, %cst_111 {dimension_numbers = #tpu.dot_dimension_numbers<[1], [0], [0], [1], [0, 0, 1, 1], [], []>} : vector<16x16xbf16>, vector<16x128xbf16>, vector<16x128xf32> -> vector<16x128xf32>
    %c1_112 = arith.constant 1 : index
    %c0_113 = arith.constant 0 : index
    %c0_114 = arith.constant 0 : index
    %178 = vector.load %arg5[%c1_112, %c0_113, %c0_114] : memref<2x16x1xf32, #tpu.memory_space<vmem>>, vector<1x16x1xf32>
    %179 = vector.shape_cast %178 : vector<1x16x1xf32> to vector<16x1xf32>
    %180 = vector.broadcast %179 : vector<16x1xf32> to vector<16x128xf32>
    %181 = arith.addf %177, %180 : vector<16x128xf32>
    %182 = vector.extract_strided_slice %181 {offsets = [0, 0], sizes = [8, 128], strides = [1, 1]} : vector<16x128xf32> to vector<8x128xf32>
    %183 = vector.extract_strided_slice %181 {offsets = [8, 0], sizes = [8, 128], strides = [1, 1]} : vector<16x128xf32> to vector<8x128xf32>
    %c9_i32_115 = arith.constant 9 : i32
    %184 = tpu.dynamic_rotate %182 by %c9_i32_115 dim 1 : vector<8x128xf32>, i32 -> vector<8x128xf32>
    %c0_116 = arith.constant 0 : index
    %c0_117 = arith.constant 0 : index
    %185 = vector.load %arg2[%c0_116, %c0_117] : memref<9x128xf32, #tpu.memory_space<vmem>>, vector<1x128xf32>
    %186 = vector.broadcast %185 : vector<1x128xf32> to vector<8x128xf32>
    %187 = arith.mulf %184, %186 : vector<8x128xf32>
    %188 = arith.truncf %187 : vector<8x128xf32> to vector<8x128xbf16>
    %c0_118 = arith.constant 0 : index
    %c0_119 = arith.constant 0 : index
    %189 = vector.load %arg16[%c0_118, %c0_119] : memref<288x128xbf16, #tpu.memory_space<vmem>>, vector<8x128xbf16>
    tpu.vector_store %arg16[%c0_118, %c0_119], %188 {strides = array<i32>} : memref<288x128xbf16, #tpu.memory_space<vmem>>, vector<8x128xbf16>,
    %c8_i32_120 = arith.constant 8 : i32
    %190 = tpu.dynamic_rotate %182 by %c8_i32_120 dim 1 : vector<8x128xf32>, i32 -> vector<8x128xf32>
    %c1_121 = arith.constant 1 : index
    %c0_122 = arith.constant 0 : index
    %191 = vector.load %arg2[%c1_121, %c0_122] : memref<9x128xf32, #tpu.memory_space<vmem>>, vector<1x128xf32>
    %192 = vector.broadcast %191 : vector<1x128xf32> to vector<8x128xf32>
    %193 = arith.mulf %190, %192 : vector<8x128xf32>
    %194 = arith.truncf %193 : vector<8x128xf32> to vector<8x128xbf16>
    %c8_123 = arith.constant 8 : index
    %c0_124 = arith.constant 0 : index
    %195 = vector.load %arg16[%c8_123, %c0_124] : memref<288x128xbf16, #tpu.memory_space<vmem>>, vector<8x128xbf16>
    tpu.vector_store %arg16[%c8_123, %c0_124], %194 {strides = array<i32>} : memref<288x128xbf16, #tpu.memory_space<vmem>>, vector<8x128xbf16>,
    %c7_i32_125 = arith.constant 7 : i32
    %196 = tpu.dynamic_rotate %182 by %c7_i32_125 dim 1 : vector<8x128xf32>, i32 -> vector<8x128xf32>
    %c2_126 = arith.constant 2 : index
    %c0_127 = arith.constant 0 : index
    %197 = vector.load %arg2[%c2_126, %c0_127] : memref<9x128xf32, #tpu.memory_space<vmem>>, vector<1x128xf32>
    %198 = vector.broadcast %197 : vector<1x128xf32> to vector<8x128xf32>
    %199 = arith.mulf %196, %198 : vector<8x128xf32>
    %200 = arith.truncf %199 : vector<8x128xf32> to vector<8x128xbf16>
    %c16_128 = arith.constant 16 : index
    %c0_129 = arith.constant 0 : index
    %201 = vector.load %arg16[%c16_128, %c0_129] : memref<288x128xbf16, #tpu.memory_space<vmem>>, vector<8x128xbf16>
    tpu.vector_store %arg16[%c16_128, %c0_129], %200 {strides = array<i32>} : memref<288x128xbf16, #tpu.memory_space<vmem>>, vector<8x128xbf16>,
    %c1_i32_130 = arith.constant 1 : i32
    %202 = tpu.dynamic_rotate %182 by %c1_i32_130 dim 1 : vector<8x128xf32>, i32 -> vector<8x128xf32>
    %c3_131 = arith.constant 3 : index
    %c0_132 = arith.constant 0 : index
    %203 = vector.load %arg2[%c3_131, %c0_132] : memref<9x128xf32, #tpu.memory_space<vmem>>, vector<1x128xf32>
    %204 = vector.broadcast %203 : vector<1x128xf32> to vector<8x128xf32>
    %205 = arith.mulf %202, %204 : vector<8x128xf32>
    %206 = arith.truncf %205 : vector<8x128xf32> to vector<8x128xbf16>
    %c24_133 = arith.constant 24 : index
    %c0_134 = arith.constant 0 : index
    %207 = vector.load %arg16[%c24_133, %c0_134] : memref<288x128xbf16, #tpu.memory_space<vmem>>, vector<8x128xbf16>
    tpu.vector_store %arg16[%c24_133, %c0_134], %206 {strides = array<i32>} : memref<288x128xbf16, #tpu.memory_space<vmem>>, vector<8x128xbf16>,
    %208 = arith.truncf %182 : vector<8x128xf32> to vector<8x128xbf16>
    %c32_135 = arith.constant 32 : index
    %c0_136 = arith.constant 0 : index
    %209 = vector.load %arg16[%c32_135, %c0_136] : memref<288x128xbf16, #tpu.memory_space<vmem>>, vector<8x128xbf16>
    tpu.vector_store %arg16[%c32_135, %c0_136], %208 {strides = array<i32>} : memref<288x128xbf16, #tpu.memory_space<vmem>>, vector<8x128xbf16>,
    %c127_i32_137 = arith.constant 127 : i32
    %210 = tpu.dynamic_rotate %182 by %c127_i32_137 dim 1 : vector<8x128xf32>, i32 -> vector<8x128xf32>
    %c5_138 = arith.constant 5 : index
    %c0_139 = arith.constant 0 : index
    %211 = vector.load %arg2[%c5_138, %c0_139] : memref<9x128xf32, #tpu.memory_space<vmem>>, vector<1x128xf32>
    %212 = vector.broadcast %211 : vector<1x128xf32> to vector<8x128xf32>
    %213 = arith.mulf %210, %212 : vector<8x128xf32>
    %214 = arith.truncf %213 : vector<8x128xf32> to vector<8x128xbf16>
    %c40_140 = arith.constant 40 : index
    %c0_141 = arith.constant 0 : index
    %215 = vector.load %arg16[%c40_140, %c0_141] : memref<288x128xbf16, #tpu.memory_space<vmem>>, vector<8x128xbf16>
    tpu.vector_store %arg16[%c40_140, %c0_141], %214 {strides = array<i32>} : memref<288x128xbf16, #tpu.memory_space<vmem>>, vector<8x128xbf16>,
    %c121_i32_142 = arith.constant 121 : i32
    %216 = tpu.dynamic_rotate %182 by %c121_i32_142 dim 1 : vector<8x128xf32>, i32 -> vector<8x128xf32>
    %c6_143 = arith.constant 6 : index
    %c0_144 = arith.constant 0 : index
    %217 = vector.load %arg2[%c6_143, %c0_144] : memref<9x128xf32, #tpu.memory_space<vmem>>, vector<1x128xf32>
    %218 = vector.broadcast %217 : vector<1x128xf32> to vector<8x128xf32>
    %219 = arith.mulf %216, %218 : vector<8x128xf32>
    %220 = arith.truncf %219 : vector<8x128xf32> to vector<8x128xbf16>
    %c48_145 = arith.constant 48 : index
    %c0_146 = arith.constant 0 : index
    %221 = vector.load %arg16[%c48_145, %c0_146] : memref<288x128xbf16, #tpu.memory_space<vmem>>, vector<8x128xbf16>
    tpu.vector_store %arg16[%c48_145, %c0_146], %220 {strides = array<i32>} : memref<288x128xbf16, #tpu.memory_space<vmem>>, vector<8x128xbf16>,
    %c120_i32_147 = arith.constant 120 : i32
    %222 = tpu.dynamic_rotate %182 by %c120_i32_147 dim 1 : vector<8x128xf32>, i32 -> vector<8x128xf32>
    %c7_148 = arith.constant 7 : index
    %c0_149 = arith.constant 0 : index
    %223 = vector.load %arg2[%c7_148, %c0_149] : memref<9x128xf32, #tpu.memory_space<vmem>>, vector<1x128xf32>
    %224 = vector.broadcast %223 : vector<1x128xf32> to vector<8x128xf32>
    %225 = arith.mulf %222, %224 : vector<8x128xf32>
    %226 = arith.truncf %225 : vector<8x128xf32> to vector<8x128xbf16>
    %c56_150 = arith.constant 56 : index
    %c0_151 = arith.constant 0 : index
    %227 = vector.load %arg16[%c56_150, %c0_151] : memref<288x128xbf16, #tpu.memory_space<vmem>>, vector<8x128xbf16>
    tpu.vector_store %arg16[%c56_150, %c0_151], %226 {strides = array<i32>} : memref<288x128xbf16, #tpu.memory_space<vmem>>, vector<8x128xbf16>,
    %c119_i32_152 = arith.constant 119 : i32
    %228 = tpu.dynamic_rotate %182 by %c119_i32_152 dim 1 : vector<8x128xf32>, i32 -> vector<8x128xf32>
    %c8_153 = arith.constant 8 : index
    %c0_154 = arith.constant 0 : index
    %229 = vector.load %arg2[%c8_153, %c0_154] : memref<9x128xf32, #tpu.memory_space<vmem>>, vector<1x128xf32>
    %230 = vector.broadcast %229 : vector<1x128xf32> to vector<8x128xf32>
    %231 = arith.mulf %228, %230 : vector<8x128xf32>
    %232 = arith.truncf %231 : vector<8x128xf32> to vector<8x128xbf16>
    %c64_155 = arith.constant 64 : index
    %c0_156 = arith.constant 0 : index
    %233 = vector.load %arg16[%c64_155, %c0_156] : memref<288x128xbf16, #tpu.memory_space<vmem>>, vector<8x128xbf16>
    tpu.vector_store %arg16[%c64_155, %c0_156], %232 {strides = array<i32>} : memref<288x128xbf16, #tpu.memory_space<vmem>>, vector<8x128xbf16>,
    %c0_157 = arith.constant 0 : index
    %c0_158 = arith.constant 0 : index
    %234 = vector.load %arg16[%c0_157, %c0_158] : memref<288x128xbf16, #tpu.memory_space<vmem>>, vector<72x128xbf16>
    %c1_159 = arith.constant 1 : index
    %c0_160 = arith.constant 0 : index
    %c0_161 = arith.constant 0 : index
    %235 = vector.load %arg6[%c1_159, %c0_160, %c0_161] : memref<2x32x72xbf16, #tpu.memory_space<vmem>>, vector<1x32x72xbf16>
    %236 = vector.shape_cast %235 : vector<1x32x72xbf16> to vector<32x72xbf16>
    %cst_162 = arith.constant dense<0.000000e+00> : vector<32x128xf32>
    %237 = tpu.matmul %236, %234, %cst_162 {dimension_numbers = #tpu.dot_dimension_numbers<[1], [0], [0], [1], [0, 0, 1, 1], [], []>} : vector<32x72xbf16>, vector<72x128xbf16>, vector<32x128xf32> -> vector<32x128xf32>
    %c1_163 = arith.constant 1 : index
    %c0_164 = arith.constant 0 : index
    %c0_165 = arith.constant 0 : index
    %238 = vector.load %arg7[%c1_163, %c0_164, %c0_165] : memref<2x32x1xf32, #tpu.memory_space<vmem>>, vector<1x32x1xf32>
    %239 = vector.shape_cast %238 : vector<1x32x1xf32> to vector<32x1xf32>
    %240 = vector.broadcast %239 : vector<32x1xf32> to vector<32x128xf32>
    %241 = arith.addf %237, %240 : vector<32x128xf32>
    %cst_166 = arith.constant 0.000000e+00 : f32
    %242 = vector.broadcast %cst_166 : f32 to vector<32x128xf32>
    %243 = arith.maximumf %241, %242 : vector<32x128xf32>
    %c1_167 = arith.constant 1 : index
    %c0_168 = arith.constant 0 : index
    %c0_169 = arith.constant 0 : index
    %244 = vector.load %arg8[%c1_167, %c0_168, %c0_169] : memref<2x32x32xbf16, #tpu.memory_space<vmem>>, vector<1x32x32xbf16>
    %245 = vector.shape_cast %244 : vector<1x32x32xbf16> to vector<32x32xbf16>
    %246 = arith.truncf %243 : vector<32x128xf32> to vector<32x128xbf16>
    %cst_170 = arith.constant dense<0.000000e+00> : vector<32x128xf32>
    %247 = tpu.matmul %245, %246, %cst_170 {dimension_numbers = #tpu.dot_dimension_numbers<[1], [0], [0], [1], [0, 0, 1, 1], [], []>} : vector<32x32xbf16>, vector<32x128xbf16>, vector<32x128xf32> -> vector<32x128xf32>
    %c1_171 = arith.constant 1 : index
    %c0_172 = arith.constant 0 : index
    %c0_173 = arith.constant 0 : index
    %248 = vector.load %arg9[%c1_171, %c0_172, %c0_173] : memref<2x32x1xf32, #tpu.memory_space<vmem>>, vector<1x32x1xf32>
    %249 = vector.shape_cast %248 : vector<1x32x1xf32> to vector<32x1xf32>
    %250 = vector.broadcast %249 : vector<32x1xf32> to vector<32x128xf32>
    %251 = arith.addf %247, %250 : vector<32x128xf32>
    %cst_174 = arith.constant 0.000000e+00 : f32
    %252 = vector.broadcast %cst_174 : f32 to vector<32x128xf32>
    %253 = arith.maximumf %251, %252 : vector<32x128xf32>
    %c9_i32_175 = arith.constant 9 : i32
    %254 = tpu.dynamic_rotate %253 by %c9_i32_175 dim 1 : vector<32x128xf32>, i32 -> vector<32x128xf32>
    %c0_176 = arith.constant 0 : index
    %c0_177 = arith.constant 0 : index
    %255 = vector.load %arg2[%c0_176, %c0_177] : memref<9x128xf32, #tpu.memory_space<vmem>>, vector<1x128xf32>
    %256 = vector.broadcast %255 : vector<1x128xf32> to vector<32x128xf32>
    %257 = arith.mulf %254, %256 : vector<32x128xf32>
    %258 = arith.truncf %257 : vector<32x128xf32> to vector<32x128xbf16>
    %c0_178 = arith.constant 0 : index
    %c0_179 = arith.constant 0 : index
    %259 = vector.load %arg16[%c0_178, %c0_179] : memref<288x128xbf16, #tpu.memory_space<vmem>>, vector<32x128xbf16>
    tpu.vector_store %arg16[%c0_178, %c0_179], %258 {strides = array<i32>} : memref<288x128xbf16, #tpu.memory_space<vmem>>, vector<32x128xbf16>,
    %c8_i32_180 = arith.constant 8 : i32
    %260 = tpu.dynamic_rotate %253 by %c8_i32_180 dim 1 : vector<32x128xf32>, i32 -> vector<32x128xf32>
    %c1_181 = arith.constant 1 : index
    %c0_182 = arith.constant 0 : index
    %261 = vector.load %arg2[%c1_181, %c0_182] : memref<9x128xf32, #tpu.memory_space<vmem>>, vector<1x128xf32>
    %262 = vector.broadcast %261 : vector<1x128xf32> to vector<32x128xf32>
    %263 = arith.mulf %260, %262 : vector<32x128xf32>
    %264 = arith.truncf %263 : vector<32x128xf32> to vector<32x128xbf16>
    %c32_183 = arith.constant 32 : index
    %c0_184 = arith.constant 0 : index
    %265 = vector.load %arg16[%c32_183, %c0_184] : memref<288x128xbf16, #tpu.memory_space<vmem>>, vector<32x128xbf16>
    tpu.vector_store %arg16[%c32_183, %c0_184], %264 {strides = array<i32>} : memref<288x128xbf16, #tpu.memory_space<vmem>>, vector<32x128xbf16>,
    %c7_i32_185 = arith.constant 7 : i32
    %266 = tpu.dynamic_rotate %253 by %c7_i32_185 dim 1 : vector<32x128xf32>, i32 -> vector<32x128xf32>
    %c2_186 = arith.constant 2 : index
    %c0_187 = arith.constant 0 : index
    %267 = vector.load %arg2[%c2_186, %c0_187] : memref<9x128xf32, #tpu.memory_space<vmem>>, vector<1x128xf32>
    %268 = vector.broadcast %267 : vector<1x128xf32> to vector<32x128xf32>
    %269 = arith.mulf %266, %268 : vector<32x128xf32>
    %270 = arith.truncf %269 : vector<32x128xf32> to vector<32x128xbf16>
    %c64_188 = arith.constant 64 : index
    %c0_189 = arith.constant 0 : index
    %271 = vector.load %arg16[%c64_188, %c0_189] : memref<288x128xbf16, #tpu.memory_space<vmem>>, vector<32x128xbf16>
    tpu.vector_store %arg16[%c64_188, %c0_189], %270 {strides = array<i32>} : memref<288x128xbf16, #tpu.memory_space<vmem>>, vector<32x128xbf16>,
    %c1_i32_190 = arith.constant 1 : i32
    %272 = tpu.dynamic_rotate %253 by %c1_i32_190 dim 1 : vector<32x128xf32>, i32 -> vector<32x128xf32>
    %c3_191 = arith.constant 3 : index
    %c0_192 = arith.constant 0 : index
    %273 = vector.load %arg2[%c3_191, %c0_192] : memref<9x128xf32, #tpu.memory_space<vmem>>, vector<1x128xf32>
    %274 = vector.broadcast %273 : vector<1x128xf32> to vector<32x128xf32>
    %275 = arith.mulf %272, %274 : vector<32x128xf32>
    %276 = arith.truncf %275 : vector<32x128xf32> to vector<32x128xbf16>
    %c96_193 = arith.constant 96 : index
    %c0_194 = arith.constant 0 : index
    %277 = vector.load %arg16[%c96_193, %c0_194] : memref<288x128xbf16, #tpu.memory_space<vmem>>, vector<32x128xbf16>
    tpu.vector_store %arg16[%c96_193, %c0_194], %276 {strides = array<i32>} : memref<288x128xbf16, #tpu.memory_space<vmem>>, vector<32x128xbf16>,
    %278 = arith.truncf %253 : vector<32x128xf32> to vector<32x128xbf16>
    %c128_195 = arith.constant 128 : index
    %c0_196 = arith.constant 0 : index
    %279 = vector.load %arg16[%c128_195, %c0_196] : memref<288x128xbf16, #tpu.memory_space<vmem>>, vector<32x128xbf16>
    tpu.vector_store %arg16[%c128_195, %c0_196], %278 {strides = array<i32>} : memref<288x128xbf16, #tpu.memory_space<vmem>>, vector<32x128xbf16>,
    %c127_i32_197 = arith.constant 127 : i32
    %280 = tpu.dynamic_rotate %253 by %c127_i32_197 dim 1 : vector<32x128xf32>, i32 -> vector<32x128xf32>
    %c5_198 = arith.constant 5 : index
    %c0_199 = arith.constant 0 : index
    %281 = vector.load %arg2[%c5_198, %c0_199] : memref<9x128xf32, #tpu.memory_space<vmem>>, vector<1x128xf32>
    %282 = vector.broadcast %281 : vector<1x128xf32> to vector<32x128xf32>
    %283 = arith.mulf %280, %282 : vector<32x128xf32>
    %284 = arith.truncf %283 : vector<32x128xf32> to vector<32x128xbf16>
    %c160_200 = arith.constant 160 : index
    %c0_201 = arith.constant 0 : index
    %285 = vector.load %arg16[%c160_200, %c0_201] : memref<288x128xbf16, #tpu.memory_space<vmem>>, vector<32x128xbf16>
    tpu.vector_store %arg16[%c160_200, %c0_201], %284 {strides = array<i32>} : memref<288x128xbf16, #tpu.memory_space<vmem>>, vector<32x128xbf16>,
    %c121_i32_202 = arith.constant 121 : i32
    %286 = tpu.dynamic_rotate %253 by %c121_i32_202 dim 1 : vector<32x128xf32>, i32 -> vector<32x128xf32>
    %c6_203 = arith.constant 6 : index
    %c0_204 = arith.constant 0 : index
    %287 = vector.load %arg2[%c6_203, %c0_204] : memref<9x128xf32, #tpu.memory_space<vmem>>, vector<1x128xf32>
    %288 = vector.broadcast %287 : vector<1x128xf32> to vector<32x128xf32>
    %289 = arith.mulf %286, %288 : vector<32x128xf32>
    %290 = arith.truncf %289 : vector<32x128xf32> to vector<32x128xbf16>
    %c192_205 = arith.constant 192 : index
    %c0_206 = arith.constant 0 : index
    %291 = vector.load %arg16[%c192_205, %c0_206] : memref<288x128xbf16, #tpu.memory_space<vmem>>, vector<32x128xbf16>
    tpu.vector_store %arg16[%c192_205, %c0_206], %290 {strides = array<i32>} : memref<288x128xbf16, #tpu.memory_space<vmem>>, vector<32x128xbf16>,
    %c120_i32_207 = arith.constant 120 : i32
    %292 = tpu.dynamic_rotate %253 by %c120_i32_207 dim 1 : vector<32x128xf32>, i32 -> vector<32x128xf32>
    %c7_208 = arith.constant 7 : index
    %c0_209 = arith.constant 0 : index
    %293 = vector.load %arg2[%c7_208, %c0_209] : memref<9x128xf32, #tpu.memory_space<vmem>>, vector<1x128xf32>
    %294 = vector.broadcast %293 : vector<1x128xf32> to vector<32x128xf32>
    %295 = arith.mulf %292, %294 : vector<32x128xf32>
    %296 = arith.truncf %295 : vector<32x128xf32> to vector<32x128xbf16>
    %c224_210 = arith.constant 224 : index
    %c0_211 = arith.constant 0 : index
    %297 = vector.load %arg16[%c224_210, %c0_211] : memref<288x128xbf16, #tpu.memory_space<vmem>>, vector<32x128xbf16>
    tpu.vector_store %arg16[%c224_210, %c0_211], %296 {strides = array<i32>} : memref<288x128xbf16, #tpu.memory_space<vmem>>, vector<32x128xbf16>,
    %c119_i32_212 = arith.constant 119 : i32
    %298 = tpu.dynamic_rotate %253 by %c119_i32_212 dim 1 : vector<32x128xf32>, i32 -> vector<32x128xf32>
    %c8_213 = arith.constant 8 : index
    %c0_214 = arith.constant 0 : index
    %299 = vector.load %arg2[%c8_213, %c0_214] : memref<9x128xf32, #tpu.memory_space<vmem>>, vector<1x128xf32>
    %300 = vector.broadcast %299 : vector<1x128xf32> to vector<32x128xf32>
    %301 = arith.mulf %298, %300 : vector<32x128xf32>
    %302 = arith.truncf %301 : vector<32x128xf32> to vector<32x128xbf16>
    %c256_215 = arith.constant 256 : index
    %c0_216 = arith.constant 0 : index
    %303 = vector.load %arg16[%c256_215, %c0_216] : memref<288x128xbf16, #tpu.memory_space<vmem>>, vector<32x128xbf16>
    tpu.vector_store %arg16[%c256_215, %c0_216], %302 {strides = array<i32>} : memref<288x128xbf16, #tpu.memory_space<vmem>>, vector<32x128xbf16>,
    %c0_217 = arith.constant 0 : index
    %c0_218 = arith.constant 0 : index
    %304 = vector.load %arg16[%c0_217, %c0_218] : memref<288x128xbf16, #tpu.memory_space<vmem>>, vector<288x128xbf16>
    %c1_219 = arith.constant 1 : index
    %c0_220 = arith.constant 0 : index
    %c0_221 = arith.constant 0 : index
    %305 = vector.load %arg10[%c1_219, %c0_220, %c0_221] : memref<2x8x288xbf16, #tpu.memory_space<vmem>>, vector<1x8x288xbf16>
    %306 = vector.shape_cast %305 : vector<1x8x288xbf16> to vector<8x288xbf16>
    %cst_222 = arith.constant dense<0.000000e+00> : vector<8x128xf32>
    %307 = tpu.matmul %306, %304, %cst_222 {dimension_numbers = #tpu.dot_dimension_numbers<[1], [0], [0], [1], [0, 0, 1, 1], [], []>} : vector<8x288xbf16>, vector<288x128xbf16>, vector<8x128xf32> -> vector<8x128xf32>
    %c1_223 = arith.constant 1 : index
    %c0_224 = arith.constant 0 : index
    %c0_225 = arith.constant 0 : index
    %308 = vector.load %arg11[%c1_223, %c0_224, %c0_225] : memref<2x8x1xf32, #tpu.memory_space<vmem>>, vector<1x8x1xf32>
    %309 = vector.shape_cast %308 : vector<1x8x1xf32> to vector<8x1xf32>
    %310 = vector.broadcast %309 : vector<8x1xf32> to vector<8x128xf32>
    %311 = arith.addf %307, %310 : vector<8x128xf32>
    %c1_226 = arith.constant 1 : index
    %c0_227 = arith.constant 0 : index
    %c0_228 = arith.constant 0 : index
    %312 = vector.load %arg12[%c1_226, %c0_227, %c0_228] : memref<2x8x288xbf16, #tpu.memory_space<vmem>>, vector<1x8x288xbf16>
    %313 = vector.shape_cast %312 : vector<1x8x288xbf16> to vector<8x288xbf16>
    %cst_229 = arith.constant dense<0.000000e+00> : vector<8x128xf32>
    %314 = tpu.matmul %313, %304, %cst_229 {dimension_numbers = #tpu.dot_dimension_numbers<[1], [0], [0], [1], [0, 0, 1, 1], [], []>} : vector<8x288xbf16>, vector<288x128xbf16>, vector<8x128xf32> -> vector<8x128xf32>
    %c1_230 = arith.constant 1 : index
    %c0_231 = arith.constant 0 : index
    %c0_232 = arith.constant 0 : index
    %315 = vector.load %arg13[%c1_230, %c0_231, %c0_232] : memref<2x8x1xf32, #tpu.memory_space<vmem>>, vector<1x8x1xf32>
    %316 = vector.shape_cast %315 : vector<1x8x1xf32> to vector<8x1xf32>
    %317 = vector.broadcast %316 : vector<8x1xf32> to vector<8x128xf32>
    %318 = arith.addf %314, %317 : vector<8x128xf32>
    %cst_233 = arith.constant 2.000000e+00 : f32
    %319 = vector.broadcast %cst_233 : f32 to vector<8x128xf32>
    %320 = arith.addf %318, %319 : vector<8x128xf32>
    %321 = math.absf %320 : vector<8x128xf32>
    %cst_234 = arith.constant 0.000000e+00 : f32
    %322 = vector.broadcast %cst_234 : f32 to vector<8x128xf32>
    %323 = arith.subf %322, %321 : vector<8x128xf32>
    %324 = math.exp %323 : vector<8x128xf32>
    %cst_235 = arith.constant 1.000000e+00 : f32
    %325 = vector.broadcast %cst_235 : f32 to vector<8x128xf32>
    %326 = arith.addf %325, %324 : vector<8x128xf32>
    %327 = tpu.reciprocal %326 {approx = true} : vector<8x128xf32> -> vector<8x128xf32>
    %cst_236 = arith.constant 0.000000e+00 : f32
    %328 = vector.broadcast %cst_236 : f32 to vector<8x128xf32>
    %329 = arith.cmpf oge, %320, %328 : vector<8x128xf32>
    %330 = arith.mulf %324, %327 : vector<8x128xf32>
    %331 = arith.select %329, %327, %330 : vector<8x128xi1>, vector<8x128xf32>
    %cst_237 = arith.constant 0.000000e+00 : f32
    %332 = vector.broadcast %cst_237 : f32 to vector<8x128xf32>
    %333 = arith.minimumf %320, %332 : vector<8x128xf32>
    %cst_238 = arith.constant 1.000000e+00 : f32
    %334 = vector.broadcast %cst_238 : f32 to vector<8x128xf32>
    %335 = arith.addf %334, %324 : vector<8x128xf32>
    %336 = math.log %335 : vector<8x128xf32>
    %337 = arith.subf %333, %336 : vector<8x128xf32>
    %338 = arith.addf %183, %311 : vector<8x128xf32>
    %339 = arith.mulf %338, %331 : vector<8x128xf32>
    %cst_239 = arith.constant dense<0.000000e+00> : vector<128xf32>
    %340 = vector.multi_reduction <add>, %337, %cst_239 [0] : vector<8x128xf32> to vector<128xf32>
    %341 = vector.shape_cast %340 : vector<128xf32> to vector<1x128xf32>
    %cst_240 = arith.constant dense<0.000000e+00> : vector<1x128xf32>
    %342 = tpu.matmul %341, %0, %cst_240 {dimension_numbers = #tpu.dot_dimension_numbers<[1], [0], [0], [1], [0, 0, 1, 1], [], []>} : vector<1x128xf32>, vector<128x128xf32>, vector<1x128xf32> -> vector<1x128xf32>
    %343 = arith.addf %172, %342 : vector<1x128xf32>
    %344 = tpu.concatenate %182, %339 in 0 : vector<8x128xf32>, vector<8x128xf32> -> vector<16x128xf32>
    %345 = arith.mulf %344, %344 : vector<16x128xf32>
    %cst_241 = arith.constant dense<0.000000e+00> : vector<128xf32>
    %346 = vector.multi_reduction <add>, %345, %cst_241 [0] : vector<16x128xf32> to vector<128xf32>
    %347 = vector.shape_cast %346 : vector<128xf32> to vector<1x128xf32>
    %cst_242 = arith.constant dense<0.000000e+00> : vector<1x128xf32>
    %348 = tpu.matmul %347, %0, %cst_242 {dimension_numbers = #tpu.dot_dimension_numbers<[1], [0], [0], [1], [0, 0, 1, 1], [], []>} : vector<1x128xf32>, vector<128x128xf32>, vector<1x128xf32> -> vector<1x128xf32>
    %cst_243 = arith.constant -5.000000e-01 : f32
    %349 = vector.broadcast %cst_243 : f32 to vector<1x128xf32>
    %350 = arith.mulf %349, %348 : vector<1x128xf32>
    %c0_244 = arith.constant 0 : index
    %c0_245 = arith.constant 0 : index
    %351 = vector.load %arg14[%c0_244, %c0_245] : memref<16x128xf32, #tpu.memory_space<vmem>>, vector<16x128xf32>
    tpu.vector_store %arg14[%c0_244, %c0_245], %344 {strides = array<i32>} : memref<16x128xf32, #tpu.memory_space<vmem>>, vector<16x128xf32>,
    %352 = tpu.concatenate %343, %350 in 0 : vector<1x128xf32>, vector<1x128xf32> -> vector<2x128xf32>
    %c0_246 = arith.constant 0 : index
    %c0_247 = arith.constant 0 : index
    %c0_248 = arith.constant 0 : index
    %353 = vector.load %arg15[%c0_246, %c0_247, %c0_248] : memref<1x2x128xf32, #tpu.memory_space<vmem>>, vector<1x2x128xf32>
    %354 = vector.shape_cast %353 : vector<1x2x128xf32> to vector<2x128xf32>
    %355 = vector.shape_cast %352 : vector<2x128xf32> to vector<1x2x128xf32>
    tpu.vector_store %arg15[%c0_246, %c0_247, %c0_248], %355 {strides = array<i32>} : memref<1x2x128xf32, #tpu.memory_space<vmem>>, vector<1x2x128xf32>,
    return
  }
  func.func @transform_0(%arg0: i32) -> (i32, i32) {
    %c0_i32 = arith.constant 0 : i32
    %c0_i32_0 = arith.constant 0 : i32
    return %c0_i32, %arg0 : i32, i32
  }
  func.func @transform_1(%arg0: i32) -> (i32, i32) {
    %c0_i32 = arith.constant 0 : i32
    %c0_i32_0 = arith.constant 0 : i32
    %c0_i32_1 = arith.constant 0 : i32
    return %c0_i32, %c0_i32_0 : i32, i32
  }
  func.func @transform_2(%arg0: i32) -> (i32, i32) {
    %c0_i32 = arith.constant 0 : i32
    %c0_i32_0 = arith.constant 0 : i32
    %c0_i32_1 = arith.constant 0 : i32
    return %c0_i32, %c0_i32_0 : i32, i32
  }
  func.func @transform_3(%arg0: i32) -> (i32, i32, i32) {
    %c0_i32 = arith.constant 0 : i32
    %c0_i32_0 = arith.constant 0 : i32
    %c0_i32_1 = arith.constant 0 : i32
    %c0_i32_2 = arith.constant 0 : i32
    return %c0_i32, %c0_i32_0, %c0_i32_1 : i32, i32, i32
  }
  func.func @transform_4(%arg0: i32) -> (i32, i32, i32) {
    %c0_i32 = arith.constant 0 : i32
    %c0_i32_0 = arith.constant 0 : i32
    %c0_i32_1 = arith.constant 0 : i32
    %c0_i32_2 = arith.constant 0 : i32
    return %c0_i32, %c0_i32_0, %c0_i32_1 : i32, i32, i32
  }
  func.func @transform_5(%arg0: i32) -> (i32, i32, i32) {
    %c0_i32 = arith.constant 0 : i32
    %c0_i32_0 = arith.constant 0 : i32
    %c0_i32_1 = arith.constant 0 : i32
    %c0_i32_2 = arith.constant 0 : i32
    return %c0_i32, %c0_i32_0, %c0_i32_1 : i32, i32, i32
  }
  func.func @transform_6(%arg0: i32) -> (i32, i32, i32) {
    %c0_i32 = arith.constant 0 : i32
    %c0_i32_0 = arith.constant 0 : i32
    %c0_i32_1 = arith.constant 0 : i32
    %c0_i32_2 = arith.constant 0 : i32
    return %c0_i32, %c0_i32_0, %c0_i32_1 : i32, i32, i32
  }
  func.func @transform_7(%arg0: i32) -> (i32, i32, i32) {
    %c0_i32 = arith.constant 0 : i32
    %c0_i32_0 = arith.constant 0 : i32
    %c0_i32_1 = arith.constant 0 : i32
    %c0_i32_2 = arith.constant 0 : i32
    return %c0_i32, %c0_i32_0, %c0_i32_1 : i32, i32, i32
  }
  func.func @transform_8(%arg0: i32) -> (i32, i32, i32) {
    %c0_i32 = arith.constant 0 : i32
    %c0_i32_0 = arith.constant 0 : i32
    %c0_i32_1 = arith.constant 0 : i32
    %c0_i32_2 = arith.constant 0 : i32
    return %c0_i32, %c0_i32_0, %c0_i32_1 : i32, i32, i32
  }
  func.func @transform_9(%arg0: i32) -> (i32, i32, i32) {
    %c0_i32 = arith.constant 0 : i32
    %c0_i32_0 = arith.constant 0 : i32
    %c0_i32_1 = arith.constant 0 : i32
    %c0_i32_2 = arith.constant 0 : i32
    return %c0_i32, %c0_i32_0, %c0_i32_1 : i32, i32, i32
  }
  func.func @transform_10(%arg0: i32) -> (i32, i32, i32) {
    %c0_i32 = arith.constant 0 : i32
    %c0_i32_0 = arith.constant 0 : i32
    %c0_i32_1 = arith.constant 0 : i32
    %c0_i32_2 = arith.constant 0 : i32
    return %c0_i32, %c0_i32_0, %c0_i32_1 : i32, i32, i32
  }
  func.func @transform_11(%arg0: i32) -> (i32, i32, i32) {
    %c0_i32 = arith.constant 0 : i32
    %c0_i32_0 = arith.constant 0 : i32
    %c0_i32_1 = arith.constant 0 : i32
    %c0_i32_2 = arith.constant 0 : i32
    return %c0_i32, %c0_i32_0, %c0_i32_1 : i32, i32, i32
  }
  func.func @transform_12(%arg0: i32) -> (i32, i32, i32) {
    %c0_i32 = arith.constant 0 : i32
    %c0_i32_0 = arith.constant 0 : i32
    %c0_i32_1 = arith.constant 0 : i32
    %c0_i32_2 = arith.constant 0 : i32
    return %c0_i32, %c0_i32_0, %c0_i32_1 : i32, i32, i32
  }
  func.func @transform_13(%arg0: i32) -> (i32, i32) {
    %c0_i32 = arith.constant 0 : i32
    %c0_i32_0 = arith.constant 0 : i32
    return %c0_i32, %arg0 : i32, i32
  }
  func.func @transform_14(%arg0: i32) -> (i32, i32, i32) {
    %c0_i32 = arith.constant 0 : i32
    %c0_i32_0 = arith.constant 0 : i32
    %c0_i32_1 = arith.constant 0 : i32
    return %arg0, %c0_i32, %c0_i32_0 : i32, i32, i32
  }
}

</mosaic_0001>

<bundles_post_ra>
// kernel: custom-call.7
= control target key start
LH: loop header
LB: loop body
LE: loop exit
PB: predicated region body
PF: predicated region fallthrough
CT: control target
= control target key end

     0   :  { %5 = vsyncpa [#allocation4], 0  ;;  %s848_s0 = inlined_call_operand.vmem [shape: f32[16,16], index: 0, kind: input, shape index: {}]   ;;  %s849_s1 = inlined_call_operand.vmem [shape: f32[16,16], index: 1, kind: output, shape index: {0}]   ;;  %s850_s2 = inlined_call_operand.hbm [shape: s32[16], index: 2, kind: output, shape index: {1}]   ;;  %s851_s3 = inlined_call_operand.hbm [shape: s32[16], index: 3, kind: output, shape index: {2}]  }
   0x1   :  { %6 = vsyncpa [#allocation7], 0  ;;  %s16_s14 = scalar_lea.vmem %s848_s0, 8 }
   0x2   :  { %p421_p0 = scmp.gt.s32.totalorder %s848_s0, %s16_s14 }
   0x3   :  { %s720_s17 = smov (!%p421_p0), [#allocation0]   ;;  %s724_s20 = smov (!%p421_p0), %s848_s0  }
   0x4   :  { %422 = sbr.rel (%p421_p0) target bundleno = 17 (0x11), region = 128 }
   0x9 LB: > { %v50_v0 = vld [vmem:[%s726_s20] sm:$0xff]  ;;  %s52_s20 = scalar_lea.vmem %s726_s20, 8   ;;  %s726_s20 = sphi %s724_s20, %s52_s20   ;;  %s722_s17 = sphi %s720_s17, %s53_s17  }
   0xa   : > { %51 = vst [vmem:[%s722_s17] sm:$0xff] %v50_v0  ;;  %s53_s17 = scalar_lea.vmem %s722_s17, 8   ;;  %p47_p1 = scmp.gt.s32.totalorder %s52_s20, %s16_s14 }
   0xc   :  { %49 = sbr.rel (!%p47_p1) target bundleno = 9 (0x9), region = 134 }
  0x11 PF:  { %v63_v1 = vld [vmem:[#allocation0] sm:$0xff]  ;;  %v67_v2 = vld [vmem:[#allocation0 + $0x8] sm:$0xff]  ;;  %v70_v3 = vlaneseq  ;;  %v744_v5 = vmov 0   ;;  %s728_s0 = smov 0  }
  0x12   :  { %64 = vst [vmem:[#allocation1] sm:$0xff] %v63_v1 }
  0x13   :  { %68 = vst [vmem:[#allocation1 + $0x8] sm:$0xff] %v67_v2  ;;  %v777_v4 = vshrl.u32 %v70_v3, 7 }
  0x14   :  { %69 = vst [vmem:[#allocation2] sm:$0x1] %v744_v5 }
  0x15 LB: > { %s459_s21 = sshll.u32 %s730_s0, 3  ;;  %s78_s0 = sadd.s32 1, %s730_s0   ;;  %s730_s0 = sphi %s728_s0, %s78_s0  }
  0x16   : > { %v82_v6 = vstv %s459_s21  ;;  %s80_s22 = scalar_lea.vmem [#allocation8], %s459_s21  ;;  %p75_p2 = scmp.ge.s32.totalorder %s78_s0, 2  }
  0x17   : > { %v83_v7 = vadd.s32 %v82_v6, %v777_v4  ;;  %s780_s23 = smov (%p75_p2), 0  }
  0x18   :  { %77 = sbr.rel (!%p75_p2) target bundleno = 21 (0x15), region = 145 }
  0x19   : > { %84 = vst [vmem:[%s80_s22] sm:$0xff] %v83_v7 }
  0x1d LB: > { %v95_v8 = vld [vmem:[#allocation1] sm:$0xff]  ;;  %v107_v9 = vld [vmem:[#allocation1 + $0x8] sm:$0xff]  ;;  %v786_v10 = vadd.s32 8, %v777_v4  ;;  %v789_v12 = vstv %s734_s23  ;;  %s153_s24 = ssub.s32 128, %s734_s23  ;;  %v800_v46 = vand.u32 127, %v70_v3  ;;  %s165_s26 = scalar_lea.vmem [#allocation1], %s734_s23  ;;  %s734_s23 = sphi %s780_s23, %s90_s23  }
  0x1e   : > { %v96_v11 = vand.u32 2147483647, %v95_v8  ;;  %v108_v13 = vand.u32 2147483647, %v107_v9  ;;  %vm99_vm0 = vcmp.ge.s32.totalorder %v777_v4, %v789_v12  ;;  %v162_v47 = vld [vmem:[#allocation2] ss:$0 sm:$0xff] }
  0x1f   : > { %vm111_vm3 = vcmp.ge.s32.totalorder %v786_v10, %v789_v12  ;;  %vm160_vm13 = vcmp.eq.s32.totalorder %v800_v46, %v789_v12  ;;  %v167_v48 = vld [vmem:[%s165_s26] ss:$0 sm:$0xff]  ;;  %s171_s28 = scalar_lea.vmem [#allocation8], %s734_s23  ;;  %vm219_vm15 = vcmp.gt.s32.totalorder %v786_v10, %v789_v12  ;;  %s90_s23 = sadd.s32 1, %s734_s23  }
  0x20   : > { %vm461_vm1 = vcmp.gt.f32.partialorder %v96_v11, -inf  ;;  %v173_v52 = vld [vmem:[%s171_s28] ss:$0 sm:$0xff]  ;;  %p87_p3 = scmp.ge.s32.totalorder %s90_s23, 16  }
  0x21   : > { %vm103_vm2 = vmand %vm99_vm0, %vm461_vm1  ;;  %vm191_vm0 = vcmp.gt.s32.totalorder %v777_v4, %v789_v12  ;;  %s736_s5 = smov (%p87_p3), %s849_s1   ;;  %s740_s6 = smov (%p87_p3), [#allocation1]  }
  0x22   : > { %v104_v14 = vsel %vm103_vm2, %v777_v4, %v789_v12  ;;  %v105_v15 = vsel %vm103_vm2, %v96_v11, -inf }
  0x23   : > { %vm114_vm4 = vcmp.lt.f32.partialorder %v105_v15, %v108_v13 }
  0x24   : > { %vm115_vm5 = vmand %vm111_vm3, %vm114_vm4 }
  0x25   : > { %v116_v16 = vsel %vm115_vm5, %v786_v10, %v104_v14  ;;  %v117_v17 = vsel %vm115_vm5, %v108_v13, %v105_v15 }
  0x26   : > { %v118_v18 = vrot.slane %v117_v17, 1  ;;  %v119_v19 = vrot.slane %v116_v16, 1 }
  0x28   : > { %vm120_vm6 = vcmp.ge.f32.partialorder %v118_v18, %v117_v17  ;;  %v123_v20 = vrot.slane %v118_v18, 1  ;;  %v124_v21 = vrot.slane %v119_v19, 1 }
  0x29   : > { %v121_v22 = vsel %vm120_vm6, %v118_v18, %v117_v17  ;;  %v122_v23 = vsel %vm120_vm6, %v119_v19, %v116_v16 }
  0x2a   : > { %vm125_vm7 = vcmp.ge.f32.partialorder %v123_v20, %v121_v22  ;;  %v128_v24 = vrot.slane %v123_v20, 1  ;;  %v129_v25 = vrot.slane %v124_v21, 1 }
  0x2b   : > { %v126_v26 = vsel %vm125_vm7, %v123_v20, %v121_v22  ;;  %v127_v27 = vsel %vm125_vm7, %v124_v21, %v122_v23 }
  0x2c   : > { %vm130_vm8 = vcmp.ge.f32.partialorder %v128_v24, %v126_v26  ;;  %v133_v28 = vrot.slane %v128_v24, 1  ;;  %v134_v29 = vrot.slane %v129_v25, 1 }
  0x2d   : > { %v131_v30 = vsel %vm130_vm8, %v128_v24, %v126_v26  ;;  %v132_v31 = vsel %vm130_vm8, %v129_v25, %v127_v27 }
  0x2e   : > { %vm135_vm9 = vcmp.ge.f32.partialorder %v133_v28, %v131_v30  ;;  %v138_v32 = vrot.slane %v133_v28, 1  ;;  %v139_v33 = vrot.slane %v134_v29, 1 }
  0x2f   : > { %v136_v34 = vsel %vm135_vm9, %v133_v28, %v131_v30  ;;  %v137_v35 = vsel %vm135_vm9, %v134_v29, %v132_v31  ;;  %vm236_vm9 = vmand %vm219_vm15, %vm160_vm13 }
  0x30   : > { %vm140_vm10 = vcmp.ge.f32.partialorder %v138_v32, %v136_v34  ;;  %v143_v36 = vrot.slane %v138_v32, 1  ;;  %v144_v37 = vrot.slane %v139_v33, 1 }
  0x31   : > { %v141_v38 = vsel %vm140_vm10, %v138_v32, %v136_v34  ;;  %v142_v39 = vsel %vm140_vm10, %v139_v33, %v137_v35 }
  0x32   : > { %vm145_vm11 = vcmp.ge.f32.partialorder %v143_v36, %v141_v38  ;;  %v148_v40 = vrot.slane %v143_v36, 1  ;;  %v149_v41 = vrot.slane %v144_v37, 1 }
  0x33   : > { %v146_v42 = vsel %vm145_vm11, %v143_v36, %v141_v38  ;;  %v147_v43 = vsel %vm145_vm11, %v144_v37, %v142_v39  ;;  %vm208_vm11 = vmand %vm191_vm0, %vm160_vm13 }
  0x34   : > { %vm150_vm12 = vcmp.ge.f32.partialorder %v148_v40, %v146_v42 }
  0x35   : > { %v152_v44 = vsel %vm150_vm12, %v149_v41, %v147_v43  ;;  %vm183_vm12 = vcmp.gt.s32.totalorder %v800_v46, %v789_v12 }
  0x36   : > { %154 = vrot.lane.b32.xlu0 %v152_v44, %s153_s24 }
  0xa8   : > { %v155_v45 = vpop.permute.xlu0 %154 }
  0xa9   : > { %466 = vpush %v155_v45 }
  0xda   : > { %s467_s25 = spop %466 }
  0xdb   : > { %v161_v49 = vstv %s467_s25  ;;  %s166_s27 = scalar_lea.vmem [#allocation1], %s467_s25  ;;  %s172_s29 = scalar_lea.vmem [#allocation8], %s467_s25 }
  0xdc   : > { %v163_v50 = vsel %vm160_vm13, %v161_v49, %v162_v47  ;;  %v168_v51 = vld [vmem:[%s166_s27] ss:$0 sm:$0xff] }
  0xdd   : > { %164 = vst [vmem:[#allocation2] sm:$0x1] %v163_v50  ;;  %v174_v53 = vld [vmem:[%s172_s29] ss:$0 sm:$0xff]  ;;  %vm177_vm14 = vcmp.ne.f32.partialorder %v168_v51, 0.0  ;;  %v184_v10 = vsel %vm183_vm12, %v168_v51, 0.0 }
  0xde   : > { %169 = vst [vmem:[%s166_s27] sm:$0x1] %v167_v48  ;;  %vm178_vm1 = vmand %vm160_vm13, %vm177_vm14 }
  0xdf   : > { %170 = vst [vmem:[%s165_s26] sm:$0x1] %v168_v51  ;;  %v179_v54 = vsel %vm178_vm1, %v168_v51, 1.0 }
  0xe0   : > { %175 = vst [vmem:[%s172_s29] sm:$0x1] %v173_v52  ;;  %v220_v55 = vsel %vm219_vm15, %v179_v54, 1.0  ;;  %v192_v56 = vsel %vm191_vm0, %v179_v54, 1.0 }
  0xe1   : > { %176 = vst [vmem:[%s171_s28] sm:$0x1] %v174_v53  ;;  %600 = vrcp.f32 %v220_v55  ;;  %v232_v62 = vand.u32 2147483648, %v220_v55  ;;  %v230_v1 = vand.u32 2147483647, %v220_v55  ;;  %v204_v2 = vand.u32 2147483648, %v192_v56 }
  0xe2   : > { %602 = vrcp.f32 %v192_v56  ;;  %v202_v6 = vand.u32 2147483647, %v192_v56  ;;  %vm226_vm4 = vweird.f32 %v220_v55  ;;  %vm198_vm6 = vweird.f32 %v192_v56 }
  0xe3   : > { %v233_v8 = vor.u32 1.1754944e-38, %v232_v62  ;;  %vm231_vm7 = vcmp.eq.f32.partialorder %v230_v1, 8.507059e+37  ;;  %v205_v13 = vor.u32 1.1754944e-38, %v204_v2 }
  0xe4   : > { %vm203_vm10 = vcmp.eq.f32.partialorder %v202_v6, 8.507059e+37  ;;  %v295_v12 = vld [vmem:[#allocation2] sm:$0x1] (%p87_p3) }
  0xe5   :  { %298 = vst [vmem:[#allocation3] sm:$0x1] (%p87_p3), %v295_v12 }
  0xe6   : > { %v216_v14 = vld [vmem:[#allocation1 + $0x8] sm:$0xff]  ;;  %v188_v18 = vld [vmem:[#allocation1] sm:$0xff] }
  0xe7   : > { %v601_v57 = vpop.eup %600 }
  0xe8   : > { %v603_v58 = vpop.eup %602  ;;  %v222_v59 = vmul.f32 %v601_v57, %v220_v55  ;;  %vm227_vm2 = vweird.f32 %v601_v57  ;;  %v243_v29 = vld [vmem:[#allocation8] sm:$0xff] (%p87_p3)  ;;  %v245_v30 = vld [vmem:[#allocation8 + $0x8] sm:$0xff] (%p87_p3) }
  0xe9   : > { %v194_v60 = vmul.f32 %v603_v58, %v192_v56  ;;  %vm199_vm3 = vweird.f32 %v603_v58  ;;  %vm228_vm5 = vmor %vm226_vm4, %vm227_vm2 }
  0xea   : > { %v223_v61 = vsub.f32 1.0, %v222_v59  ;;  %vm200_vm8 = vmor %vm198_vm6, %vm199_vm3 }
  0xeb   : > { %v195_v63 = vsub.f32 1.0, %v194_v60 }
  0xec   : > { %v224_v0 = vmul.f32 %v601_v57, %v223_v61 }
  0xed   : > { %v196_v5 = vmul.f32 %v603_v58, %v195_v63 }
  0xee   : > { %v225_v7 = vadd.f32 %v601_v57, %v224_v0 }
  0xef   : > { %v197_v9 = vadd.f32 %v603_v58, %v196_v5 }
  0xf0   : > { %v229_v11 = vsel %vm228_vm5, %v601_v57, %v225_v7 }
  0xf1   : > { %v234_v15 = vsel %vm231_vm7, %v233_v8, %v229_v11  ;;  %v201_v16 = vsel %vm200_vm8, %v603_v58, %v197_v9 }
  0xf2   : > { %v235_v17 = vmul.f32 %v234_v15, %v216_v14  ;;  %v206_v19 = vsel %vm203_vm10, %v205_v13, %v201_v16 }
  0xf3   : > { %v207_v20 = vmul.f32 %v206_v19, %v188_v18 }
  0xf4   : > { %v237_v21 = vsel %vm236_vm9, %v235_v17, 0.0 }
  0xf5   : > { %238 = vadd.xlane.f32.xlu1 %v237_v21  ;;  %v209_v22 = vsel %vm208_vm11, %v207_v20, 0.0 }
  0xf6   : > { %210 = vadd.xlane.f32.xlu0 %v209_v22 }
 0x11f   :  { %260 = vxpose.xlu0.b32.start [1/2] (short) (narrow) (%p87_p3), %v243_v29, 8 }
 0x127   :  { %261 = vxpose.xlu0.b32.end [2/2] (short) (narrow) (%p87_p3), %v245_v30, 8 }
 0x168   : > { %v239_v23 = vpop.xlane.xlu1 %238 }
 0x169   : > { %v240_v24 = vmul.f32 %v239_v23, %v184_v10  ;;  %v211_v25 = vpop.xlane.xlu0 %210 }
 0x16a   : > { %v212_v26 = vmul.f32 %v211_v25, %v184_v10  ;;  %89 = sbr.rel (!%p87_p3) target bundleno = 29 (0x1d), region = 156 }
 0x16b   : > { %v241_v27 = vsub.f32 %v235_v17, %v240_v24 }
 0x16c   : > { %v213_v28 = vsub.f32 %v207_v20, %v212_v26 }
 0x16d   : > { %242 = vst [vmem:[#allocation1 + $0x8] sm:$0xff] %v241_v27 }
 0x16e   : > { %214 = vst [vmem:[#allocation1] sm:$0xff] %v213_v28 }
 0x1c3   :  { %v276_v31 = vpop.trf.xlu0 }
 0x1c4   :  { %292 = vst [vmem:[#allocation5] sm:$0x1] %v276_v31 }
 0x1cb   :  { %v301_v32 = vld [vmem:[#allocation5] sm:$0x1] }
 0x1cc   :  { %304 = vst [vmem:[#allocation6] sm:$0x1] %v301_v32 }
 0x1cd LB: > { %v348_v33 = vld [vmem:[%s742_s6] sm:$0xff]  ;;  %s350_s6 = scalar_lea.vmem %s742_s6, 8   ;;  %s742_s6 = sphi %s740_s6, %s350_s6   ;;  %s738_s5 = sphi %s736_s5, %s351_s5  }
 0x1ce   : > { %349 = vst [vmem:[%s738_s5] sm:$0xff] %v348_v33  ;;  %s351_s5 = scalar_lea.vmem %s738_s5, 8   ;;  %p345_p4 = scmp.gt.s32.totalorder %s350_s6, [#allocation1 + $0x8] }
 0x1cf   :  { %s368_s9 = sshll.u32 (%p345_p4), %s850_s2, 4  ;;  %s745_s10 = smov (%p345_p4), [#allocation3]   ;;  %s369_s9 = int_to_ptr.hbm [resolvable:$true] %s368_s9 }
 0x1d0   :  { %347 = sbr.rel (!%p345_p4) target bundleno = 461 (0x1cd), region = 178  ;;  %s366_s11 = sshll.u32 (%p345_p4), %s745_s10, 4  ;;  %s367_s11 = int_to_ptr.vmem [resolvable:$true] %s366_s11 }
 0x1d1   :  { %371 = dma.vmem_to_hbm [thread:$0]  (%p345_p4), %s367_s11, 16, %s369_s9, [#allocation4]  }
 0x1d2   :  { %s746_s1 = smov (%p345_p4), [#allocation6]   ;;  %s379_s15 = sshll.u32 (%p345_p4), %s851_s3, 4  ;;  %s380_s15 = int_to_ptr.hbm [resolvable:$true] %s379_s15 }
 0x1d3   :  { %s377_s12 = sshll.u32 (%p345_p4), %s746_s1, 4  ;;  %s378_s12 = int_to_ptr.vmem [resolvable:$true] %s377_s12 }
 0x1d4   :  { %382 = dma.vmem_to_hbm [thread:$0]  (%p345_p4), %s378_s12, 16, %s380_s15, [#allocation7]  }
 0x1d5   :  { %716 = dma.done.wait [#allocation4], 16  }
 0x1d6   :  { %717 = vsyncadd [#allocation4], 4294967280 }
 0x1d7   :  { %718 = dma.done.wait [#allocation7], 16  }
 0x1d8   :  { %719 = vsyncadd [#allocation7], 4294967280 }
 0x1d9   :  { %391 = vsyncpa [#allocation4], 1 }
 0x1da   :  { %392 = vsyncpa [#allocation7], 1 }

// kernel: flownet_v2_forward.1
= control target key start
LH: loop header
LB: loop body
LE: loop exit
PB: predicated region body
PF: predicated region fallthrough
CT: control target
= control target key end

     0   :  { %v2225_v2 = vmov 0   ;;  %vm85_vm0 = vcmask 130048   ;;  %s2227_s21 = smov 121   ;;  %s2228_s22 = smov 119   ;;  %vm242_vm1 = vcmask 1043456   ;;  %vm235_vm2 = vcmask 588800   ;;  %s2776_s0 = inlined_call_operand.vmem [shape: f32[16,128], index: 0, kind: input, shape index: {}]   ;;  %s2777_s3 = inlined_call_operand.vmem [shape: bf16[2,16,16], index: 3, kind: input, shape index: {}]   ;;  %s2778_s4 = inlined_call_operand.vmem [shape: f32[2,16,1], index: 4, kind: input, shape index: {}]   ;;  %s2779_s1 = inlined_call_operand.vmem [shape: f32[9,128], index: 1, kind: input, shape index: {}]   ;;  %s2780_s6 = inlined_call_operand.vmem [shape: f32[2,32,1], index: 6, kind: input, shape index: {}]   ;;  %s2781_s8 = inlined_call_operand.vmem [shape: f32[2,32,1], index: 8, kind: input, shape index: {}]   ;;  %s2782_s5 = inlined_call_operand.vmem [shape: bf16[2,32,72], index: 5, kind: input, shape index: {}]   ;;  %s2783_s7 = inlined_call_operand.vmem [shape: bf16[2,32,32], index: 7, kind: input, shape index: {}]   ;;  %s2784_s12 = inlined_call_operand.vmem [shape: f32[2,8,1], index: 12, kind: input, shape index: {}]   ;;  %s2785_s10 = inlined_call_operand.vmem [shape: f32[2,8,1], index: 10, kind: input, shape index: {}]   ;;  %s2786_s9 = inlined_call_operand.vmem [shape: bf16[2,8,288], index: 9, kind: input, shape index: {}]   ;;  %s2787_s11 = inlined_call_operand.vmem [shape: bf16[2,8,288], index: 11, kind: input, shape index: {}]   ;;  %s2788_s13 = inlined_call_operand.vmem [shape: f32[16,128], index: 13, kind: output, shape index: {0}]   ;;  %s2789_s2 = inlined_call_operand.vmem [shape: f32[128,128], index: 2, kind: input, shape index: {}]   ;;  %s2790_s14 = inlined_call_operand.vmem [shape: f32[1,2,128], index: 14, kind: output, shape index: {1}]  }
   0x1   :  { %v63_v0 = vld [vmem:[%s2776_s0] sm:$0xff]  ;;  %v64_v1 = vld [vmem:[%s2776_s0 + $0x8] sm:$0xff]  ;;  %2178 = vset.pattern.permute.xlu0 %v2225_v2  ;;  %2179 = vset.pattern.permute.xlu1 %v2225_v2  ;;  %s2226_s0 = smov 127   ;;  %s2229_s23 = smov 7   ;;  %v176_v10 = vld [vmem:[%s2780_s6 + $0x10] sm:$0xff]  ;;  %vm309_vm3 = vcmask 261120  }
   0x2   :  { %v67_v3 = vpack.c.bf16 %v64_v1, %v63_v0  ;;  %v68_v4 = vld [vmem:[%s2778_s4] sm:$0xff]  ;;  %2180 = vset.pattern.permute.xlu2 %v2225_v2  ;;  %s2230_s24 = smov 120   ;;  %s2231_s25 = smov 1   ;;  %v175_v11 = vld [vmem:[%s2780_s6 + $0x8] sm:$0xff]  ;;  %v177_v50 = vld [vmem:[%s2780_s6 + $0x18] sm:$0xff]  ;;  %vm1634_vm6 = vcmask 1040384  }
   0x3   :  { %v1901_v5 = vld [vmem:[%s2777_s3] sm:$0xff]  ;;  %72 = vperm.xlu0 %2178, %v68_v4   ;;  %s2232_s28 = smov 8   ;;  %s2233_s29 = smov 9   ;;  %v2185_v26 = vld [vmem:[%s2779_s1 + $0x8] ss:$0 sm:$0xff]  ;;  %v277_v53 = vld [vmem:[%s2781_s8 + $0x10] sm:$0xff] }
   0x4   :  { %96 = vmatpush.bf16.msra.mxu0 %v67_v3  ;;  %v275_v12 = vld [vmem:[%s2781_s8] sm:$0xff]  ;;  %v278_v55 = vld [vmem:[%s2781_s8 + $0x18] sm:$0xff]  ;;  %v276_v58 = vld [vmem:[%s2781_s8 + $0x8] sm:$0xff] }
   0x5   :  { %v2181_v13 = vld [vmem:[%s2779_s1 + $0x5] ss:$0 sm:$0xff]  ;;  %v2182_v17 = vld [vmem:[%s2779_s1 + $0x2] ss:$0 sm:$0xff]  ;;  %v2183_v21 = vld [vmem:[%s2779_s1 + $0x1] ss:$0 sm:$0xff] }
   0x6   :  { %v2184_v25 = vld [vmem:[%s2779_s1 + $0x6] ss:$0 sm:$0xff]  ;;  %v2186_v33 = vld [vmem:[%s2779_s1 + $0x7] ss:$0 sm:$0xff]  ;;  %v2187_v34 = vld [vmem:[%s2779_s1 + $0x3] ss:$0 sm:$0xff] }
   0x7   :  { %1649 = vmatmul.msk.bf16.vlgmr.msra.gmra.mxu0 %vm85_vm0, %v1901_v5  ;;  %v2188_v41 = vld [vmem:[%s2779_s1] ss:$0 sm:$0xff]  ;;  %v1907_v59 = vld [vmem:[%s2782_s5 + $0x8] sm:$0xff] }
   0x8   :  { %v174_v51 = vld [vmem:[%s2780_s6] sm:$0xff] }
   0x9   :  { %v1906_v57 = vld [vmem:[%s2782_s5] sm:$0xff] }
  0x75   :  { %v73_v6 = vpop.permute.xlu0 %72 }
  0x84   :  { %v98_v7 = vpop.f32.mrf.mxu0 }
  0x85   :  { %v2322_v8 = vadd.f32 %v98_v7, %v73_v6 }
  0x87   :  { %133 = vrot.lane.b32.xlu2 %v2322_v8, %s2226_s0  ;;  %140 = vrot.lane.b32.xlu1 %v2322_v8, %s2227_s21  ;;  %v131_v9 = vpack.c.bf16 %v2322_v8, %v2322_v8 }
  0x88   :  { %154 = vrot.lane.b32.xlu0 %v2322_v8, %s2228_s22 }
  0x89   :  { %132 = vst [vmem:[#allocation2 + $0x10] sm:$0xf] %v131_v9 }
  0x8f   :  { %117 = vrot.lane.b32.xlu2 %v2322_v8, %s2229_s23  ;;  %147 = vrot.lane.b32.xlu1 %v2322_v8, %s2230_s24 }
  0x90   :  { %124 = vrot.lane.b32.xlu0 %v2322_v8, %s2231_s25 }
  0x97   :  { %110 = vrot.lane.b32.xlu2 %v2322_v8, %s2232_s28  ;;  %103 = vrot.lane.b32.xlu1 %v2322_v8, %s2233_s29 }
  0x98   :  { %190 = vperm.xlu0 %2178, %v176_v10  }
  0x9f   :  { %195 = vperm.xlu1 %2179, %v177_v50   ;;  %180 = vperm.xlu2 %2180, %v174_v51  }
  0xa0   :  { %185 = vperm.xlu0 %2178, %v175_v11  }
  0xa7   :  { %291 = vperm.xlu1 %2179, %v277_v53   ;;  %296 = vperm.xlu2 %2180, %v278_v55  }
  0xa8   :  { %281 = vperm.xlu0 %2178, %v275_v12  }
  0xaf   :  { %286 = vperm.xlu1 %2179, %v276_v58  }
  0xe1   :  { %v134_v14 = vpop.permute.xlu2 %133 }
  0xe2   :  { %v137_v15 = vmul.f32 %v2181_v13, %v134_v14 }
  0xe4   :  { %v138_v16 = vpack.c.bf16 %v137_v15, %v137_v15  ;;  %v1908_v15 = vld [vmem:[%s2783_s7] sm:$0xff] }
  0xe6   :  { %139 = vst [vmem:[#allocation2 + $0x14] sm:$0xf] %v138_v16  ;;  %v1909_v16 = vld [vmem:[%s2783_s7 + $0x8] sm:$0xff] }
  0xe9   :  { %v118_v18 = vpop.permute.xlu2 %117 }
  0xea   :  { %v121_v19 = vmul.f32 %v2182_v17, %v118_v18 }
  0xec   :  { %v122_v20 = vpack.c.bf16 %v121_v19, %v121_v19 }
  0xed   :  { %v1904_v52 = vld [vmem:[#allocation2 + $0x10] sm:$0xff] }
  0xee   :  { %123 = vst [vmem:[#allocation2 + $0x8] sm:$0xf] %v122_v20 }
  0xf1   :  { %v111_v22 = vpop.permute.xlu2 %110 }
  0xf2   :  { %v114_v23 = vmul.f32 %v2183_v21, %v111_v22 }
  0xf4   :  { %v115_v24 = vpack.c.bf16 %v114_v23, %v114_v23 }
  0xf6   :  { %116 = vst [vmem:[#allocation2 + $0x4] sm:$0xf] %v115_v24 }
  0xf9   :  { %v141_v27 = vpop.permute.xlu1 %140  ;;  %v181_v1 = vpop.permute.xlu2 %180 }
  0xfa   :  { %v144_v28 = vmul.f32 %v2184_v25, %v141_v27  ;;  %v155_v29 = vpop.permute.xlu0 %154 }
  0xfb   :  { %v158_v30 = vmul.f32 %v2185_v26, %v155_v29 }
  0xfc   :  { %v145_v31 = vpack.c.bf16 %v144_v28, %v144_v28 }
  0xfd   :  { %v159_v32 = vpack.c.bf16 %v158_v30, %v158_v30 }
  0xfe   :  { %146 = vst [vmem:[#allocation2 + $0x18] sm:$0xf] %v145_v31 }
  0xff   :  { %160 = vst [vmem:[#allocation2 + $0x20] sm:$0xf] %v159_v32 }
 0x101   :  { %v148_v35 = vpop.permute.xlu1 %147  ;;  %v297_v29 = vpop.permute.xlu2 %296 }
 0x102   :  { %v151_v36 = vmul.f32 %v2186_v33, %v148_v35  ;;  %v125_v37 = vpop.permute.xlu0 %124  ;;  %v729_v35 = vld [vmem:[%s2784_s12] sm:$0xff] }
 0x103   :  { %v128_v38 = vmul.f32 %v2187_v34, %v125_v37  ;;  %v69_v37 = vld [vmem:[%s2778_s4 + $0x8] sm:$0xff] }
 0x104   :  { %v152_v39 = vpack.c.bf16 %v151_v36, %v151_v36  ;;  %v561_v36 = vld [vmem:[%s2785_s10] sm:$0xff] }
 0x105   :  { %v129_v40 = vpack.c.bf16 %v128_v38, %v128_v38  ;;  %v1762_v38 = vld [vmem:[%s2778_s4 + $0x10] sm:$0xff] }
 0x106   :  { %153 = vst [vmem:[#allocation2 + $0x1c] sm:$0xf] %v152_v39  ;;  %v169_v42 = vld [vmem:[#allocation2 + $0x20] sm:$0xf] }
 0x107   :  { %130 = vst [vmem:[#allocation2 + $0xc] sm:$0xf] %v129_v40  ;;  %v225_v43 = vunpack.c.l.b16 %v169_v42  ;;  %v2190_v42 = vld [vmem:[%s2779_s1 + $0x3] ss:$0 sm:$0xff] }
 0x109   :  { %v104_v44 = vpop.permute.xlu1 %103  ;;  %v230_v45 = vpack.c.b16 %v225_v43, %v225_v43 }
 0x10a   :  { %v107_v46 = vmul.f32 %v2188_v41, %v104_v44  ;;  %v191_v62 = vpop.permute.xlu0 %190 }
 0x10b   :  { %v244_v47 = vsel %vm242_vm1, %v230_v45, 0 }
 0x10c   :  { %v108_v48 = vpack.c.bf16 %v107_v46, %v107_v46  ;;  %249 = vmatpush.bf16.msra.mxu1 %v244_v47 }
 0x10d   :  { %v1905_v49 = vld [vmem:[#allocation2 + $0x18] sm:$0xff] }
 0x10e   :  { %109 = vst [vmem:[#allocation2] sm:$0xf] %v108_v48  ;;  %v1903_v54 = vld [vmem:[#allocation2 + $0x8] sm:$0xff] }
 0x110   :  { %250 = vmatpush.bf16.msra.mxu1 %v1905_v49  ;;  %v2191_v49 = vld [vmem:[%s2779_s1 + $0x2] ss:$0 sm:$0xff] }
 0x111   :  { %v196_v3 = vpop.permute.xlu1 %195 }
 0x112   :  { %v186_v0 = vpop.permute.xlu0 %185 }
 0x114   :  { %251 = vmatpush.bf16.msra.mxu1 %v1904_v52 }
 0x115   :  { %v1902_v56 = vld [vmem:[#allocation2] sm:$0xff] }
 0x118   :  { %252 = vmatpush.bf16.msra.mxu1 %v1903_v54 }
 0x119   :  { %v292_v17 = vpop.permute.xlu1 %291 }
 0x11a   :  { %v282_v18 = vpop.permute.xlu0 %281 }
 0x11c   :  { %253 = vmatpush.bf16.msra.mxu1 %v1902_v56  ;;  %v2189_v56 = vld [vmem:[%s2779_s1 + $0x6] ss:$0 sm:$0xff] }
 0x11f   :  { %1674 = vmatmul.msk.bf16.vlgmr.msra.gmra.mxu1 %vm235_vm2, %v1906_v57  ;;  %v2192_v57 = vld [vmem:[%s2779_s1 + $0x7] ss:$0 sm:$0xff] }
 0x121   :  { %v287_v22 = vpop.permute.xlu1 %286 }
 0x12f   :  { %1675 = vmatmul.msk.bf16.gmra.mxu1 %vm235_vm2, %v1907_v59 }
 0x19c   :  { %v255_v60 = vpop.f32.mrf.mxu1 }
 0x19d   :  { %v256_v7 = vadd.f32 %v255_v60, %v181_v1 }
 0x19f   :  { %v265_v13 = vmax.f32 %v256_v7, 0.0 }
 0x1a4   :  { %v257_v61 = vpop.f32.mrf.mxu1 }
 0x1a5   :  { %v258_v5 = vadd.f32 %v257_v61, %v186_v0 }
 0x1a7   :  { %v266_v11 = vmax.f32 %v258_v5, 0.0 }
 0x1a9   :  { %v273_v14 = vpack.c.bf16 %v266_v11, %v265_v13 }
 0x1ac   :  { %v260_v63 = vpop.f32.mrf.mxu1 }
 0x1ad   :  { %v261_v2 = vadd.f32 %v260_v63, %v191_v62 }
 0x1af   :  { %v267_v9 = vmax.f32 %v261_v2, 0.0 }
 0x1b4   :  { %v262_v4 = vpop.f32.mrf.mxu1 }
 0x1b5   :  { %v263_v6 = vadd.f32 %v262_v4, %v196_v3  ;;  %v2193_v3 = vld [vmem:[%s2779_s1 + $0x1] ss:$0 sm:$0xff] }
 0x1b7   :  { %v268_v10 = vmax.f32 %v263_v6, 0.0 }
 0x1b9   :  { %v274_v12 = vpack.c.bf16 %v268_v10, %v267_v9 }
 0x1bb   :  { %322 = vmatpush.bf16.msra.mxu2 %v274_v12 }
 0x1bf   :  { %323 = vmatpush.bf16.msra.mxu2 %v273_v14 }
 0x1c2   :  { %1684 = vmatmul.msk.bf16.vlgmr.msra.gmra.mxu2 %vm309_vm3, %v1908_v15 }
 0x1d2   :  { %1685 = vmatmul.msk.bf16.gmra.mxu2 %vm309_vm3, %v1909_v16 }
 0x245   :  { %v325_v19 = vpop.f32.mrf.mxu2 }
 0x246   :  { %v326_v20 = vadd.f32 %v325_v19, %v282_v18 }
 0x248   :  { %v335_v21 = vmax.f32 %v326_v20, 0.0 }
 0x24a   :  { %457 = vrot.lane.b32.xlu2 %v335_v21, %s2227_s21  ;;  %479 = vrot.lane.b32.xlu0 %v335_v21, %s2230_s24 }
 0x24b   :  { %405 = vrot.lane.b32.xlu1 %v335_v21, %s2231_s25 }
 0x24d   :  { %v327_v23 = vpop.f32.mrf.mxu2 }
 0x24e   :  { %v328_v24 = vadd.f32 %v327_v23, %v287_v22 }
 0x250   :  { %v336_v25 = vmax.f32 %v328_v24, 0.0 }
 0x252   :  { %407 = vrot.lane.b32.xlu2 %v336_v25, %s2231_s25  ;;  %361 = vrot.lane.b32.xlu0 %v335_v21, %s2232_s28  ;;  %v1998_v26 = vpack.c.bf16 %v336_v25, %v335_v21 }
 0x253   :  { %383 = vrot.lane.b32.xlu1 %v335_v21, %s2229_s23 }
 0x254   :  { %2142 = vst [vmem:[#allocation2 + $0x40] sm:$0xff] %v1998_v26  }
 0x255   :  { %v330_v27 = vpop.f32.mrf.mxu2 }
 0x256   :  { %v331_v28 = vadd.f32 %v330_v27, %v292_v17 }
 0x258   :  { %v337_v32 = vmax.f32 %v331_v28, 0.0 }
 0x25a   :  { %385 = vrot.lane.b32.xlu2 %v336_v25, %s2229_s23  ;;  %459 = vrot.lane.b32.xlu0 %v336_v25, %s2227_s21 }
 0x25b   :  { %481 = vrot.lane.b32.xlu1 %v336_v25, %s2230_s24 }
 0x25d   :  { %v332_v30 = vpop.f32.mrf.mxu2 }
 0x25e   :  { %v333_v31 = vadd.f32 %v332_v30, %v297_v29  ;;  %v2194_v30 = vld [vmem:[%s2779_s1] ss:$0 sm:$0xff] }
 0x260   :  { %v338_v33 = vmax.f32 %v333_v31, 0.0 }
 0x262   :  { %409 = vrot.lane.b32.xlu2 %v337_v32, %s2231_s25  ;;  %387 = vrot.lane.b32.xlu0 %v337_v32, %s2229_s23  ;;  %v2003_v34 = vpack.c.bf16 %v338_v33, %v337_v32 }
 0x263   :  { %363 = vrot.lane.b32.xlu1 %v336_v25, %s2232_s28 }
 0x264   :  { %2143 = vst [vmem:[#allocation2 + $0x48] sm:$0xff] %v2003_v34  }
 0x26a   :  { %483 = vrot.lane.b32.xlu2 %v337_v32, %s2230_s24  ;;  %411 = vrot.lane.b32.xlu0 %v338_v33, %s2231_s25 }
 0x26b   :  { %461 = vrot.lane.b32.xlu1 %v337_v32, %s2227_s21 }
 0x272   :  { %365 = vrot.lane.b32.xlu2 %v337_v32, %s2232_s28  ;;  %485 = vrot.lane.b32.xlu0 %v338_v33, %s2230_s24 }
 0x273   :  { %389 = vrot.lane.b32.xlu1 %v338_v33, %s2229_s23 }
 0x27a   :  { %339 = vrot.lane.b32.xlu2 %v335_v21, %s2233_s29  ;;  %367 = vrot.lane.b32.xlu0 %v338_v33, %s2232_s28 }
 0x27b   :  { %343 = vrot.lane.b32.xlu1 %v337_v32, %s2233_s29 }
 0x282   :  { %463 = vrot.lane.b32.xlu2 %v338_v33, %s2227_s21  ;;  %439 = vrot.lane.b32.xlu0 %v337_v32, %s2226_s0 }
 0x283   :  { %441 = vrot.lane.b32.xlu1 %v338_v33, %s2226_s0 }
 0x28a   :  { %345 = vrot.lane.b32.xlu2 %v338_v33, %s2233_s29  ;;  %341 = vrot.lane.b32.xlu0 %v336_v25, %s2233_s29 }
 0x28b   :  { %435 = vrot.lane.b32.xlu1 %v335_v21, %s2226_s0 }
 0x292   :  { %437 = vrot.lane.b32.xlu2 %v336_v25, %s2226_s0  ;;  %505 = vrot.lane.b32.xlu0 %v337_v32, %s2228_s22 }
 0x293   :  { %507 = vrot.lane.b32.xlu1 %v338_v33, %s2228_s22 }
 0x29a   :  { %501 = vrot.lane.b32.xlu2 %v335_v21, %s2228_s22  ;;  %503 = vrot.lane.b32.xlu0 %v336_v25, %s2228_s22 }
 0x29b   :  { %732 = vperm.xlu1 %2179, %v729_v35  }
 0x2a2   :  { %564 = vperm.xlu2 %2180, %v561_v36   ;;  %77 = vperm.xlu0 %2178, %v69_v37  }
 0x2a3   :  { %818 = vperm.xlu1 %2179, %v1762_v38  }
 0x2a4   :  { %v458_v39 = vpop.permute.xlu2 %457 }
 0x2a5   :  { %v467_v60 = vmul.f32 %v2189_v56, %v458_v39 }
 0x2ac   :  { %v408_v40 = vpop.permute.xlu2 %407 }
 0x2ad   :  { %v416_v46 = vmul.f32 %v2190_v42, %v408_v40 }
 0x2b4   :  { %v386_v41 = vpop.permute.xlu2 %385 }
 0x2b5   :  { %v394_v53 = vmul.f32 %v2191_v49, %v386_v41 }
 0x2bc   :  { %v410_v43 = vpop.permute.xlu2 %409  ;;  %v480_v44 = vpop.permute.xlu0 %479 }
 0x2bd   :  { %v406_v45 = vpop.permute.xlu1 %405  ;;  %v489_v63 = vmul.f32 %v2192_v57, %v480_v44  ;;  %v417_v13 = vmul.f32 %v2190_v42, %v410_v43 }
 0x2be   :  { %v415_v47 = vmul.f32 %v2190_v42, %v406_v45 }
 0x2c0   :  { %v1988_v48 = vpack.c.bf16 %v416_v46, %v415_v47 }
 0x2c2   :  { %2140 = vst [vmem:[#allocation2 + $0x30] sm:$0xff] %v1988_v48  }
 0x2c4   :  { %v484_v50 = vpop.permute.xlu2 %483  ;;  %v362_v51 = vpop.permute.xlu0 %361 }
 0x2c5   :  { %v384_v52 = vpop.permute.xlu1 %383  ;;  %v371_v7 = vmul.f32 %v2193_v3, %v362_v51  ;;  %v491_v21 = vmul.f32 %v2192_v57, %v484_v50 }
 0x2c6   :  { %v393_v54 = vmul.f32 %v2191_v49, %v384_v52 }
 0x2c8   :  { %v1978_v55 = vpack.c.bf16 %v394_v53, %v393_v54 }
 0x2c9   :  { %v1916_v32 = vld [vmem:[#allocation2 + $0x30] sm:$0xff] }
 0x2ca   :  { %2138 = vst [vmem:[#allocation2 + $0x20] sm:$0xff] %v1978_v55  }
 0x2cc   :  { %v366_v58 = vpop.permute.xlu2 %365  ;;  %v460_v59 = vpop.permute.xlu0 %459 }
 0x2cd   :  { %v468_v61 = vmul.f32 %v2189_v56, %v460_v59  ;;  %v482_v62 = vpop.permute.xlu1 %481  ;;  %v373_v33 = vmul.f32 %v2193_v3, %v366_v58 }
 0x2ce   :  { %v490_v0 = vmul.f32 %v2192_v57, %v482_v62 }
 0x2cf   :  { %v2018_v1 = vpack.c.bf16 %v468_v61, %v467_v60 }
 0x2d0   :  { %v2028_v2 = vpack.c.bf16 %v490_v0, %v489_v63 }
 0x2d1   :  { %2146 = vst [vmem:[#allocation2 + $0x60] sm:$0xff] %v2018_v1   ;;  %v1914_v47 = vld [vmem:[#allocation2 + $0x20] sm:$0xff] }
 0x2d2   :  { %2148 = vst [vmem:[#allocation2 + $0x70] sm:$0xff] %v2028_v2   ;;  %v559_v1 = vld [vmem:[%s2786_s9] sm:$0xff] }
 0x2d3   :  { %v727_v2 = vld [vmem:[%s2787_s11] sm:$0xff] }
 0x2d4   :  { %v2466_v4 = vpop.permute.xlu2 %339  ;;  %v388_v5 = vpop.permute.xlu0 %387 }
 0x2d5   :  { %v364_v6 = vpop.permute.xlu1 %363  ;;  %v395_v24 = vmul.f32 %v2191_v49, %v388_v5  ;;  %v349_v55 = vmul.f32 %v2194_v30, %v2466_v4 }
 0x2d6   :  { %v372_v9 = vmul.f32 %v2193_v3, %v364_v6 }
 0x2d8   :  { %v1968_v10 = vpack.c.bf16 %v372_v9, %v371_v7  ;;  %v1922_v54 = vld [vmem:[#allocation2 + $0x60] sm:$0xff]  ;;  %v569_v7 = vunpack.c.l.b16 %v559_v1  ;;  %v737_v9 = vunpack.c.l.b16 %v727_v2 }
 0x2d9   :  { %v2477_v44 = vld [vmem:[#allocation2 + $0x70] sm:$0xff] }
 0x2da   :  { %2136 = vst [vmem:[#allocation2 + $0x10] sm:$0xff] %v1968_v10  }
 0x2dc   :  { %v464_v11 = vpop.permute.xlu2 %463  ;;  %v412_v12 = vpop.permute.xlu0 %411 }
 0x2dd   :  { %v470_v14 = vmul.f32 %v2189_v56, %v464_v11  ;;  %v418_v15 = vmul.f32 %v2190_v42, %v412_v12  ;;  %v462_v16 = vpop.permute.xlu1 %461  ;;  %v2195_v42 = vld [vmem:[%s2779_s1 + $0x5] ss:$0 sm:$0xff] }
 0x2de   :  { %v469_v17 = vmul.f32 %v2189_v56, %v462_v16 }
 0x2df   :  { %v1993_v18 = vpack.c.bf16 %v418_v15, %v417_v13  ;;  %v740_v15 = vpack.c.b16 %v737_v9, %v737_v9 }
 0x2e0   :  { %v2023_v19 = vpack.c.bf16 %v470_v14, %v469_v17  ;;  %v572_v14 = vpack.c.b16 %v569_v7, %v569_v7 }
 0x2e1   :  { %2141 = vst [vmem:[#allocation2 + $0x38] sm:$0xff] %v1993_v18   ;;  %v1912_v58 = vld [vmem:[#allocation2 + $0x10] sm:$0xff] }
 0x2e2   :  { %2147 = vst [vmem:[#allocation2 + $0x68] sm:$0xff] %v2023_v19  }
 0x2e4   :  { %v486_v20 = vpop.permute.xlu0 %485  ;;  %v346_v29 = vpop.permute.xlu2 %345 }
 0x2e5   :  { %v492_v22 = vmul.f32 %v2192_v57, %v486_v20  ;;  %v390_v23 = vpop.permute.xlu1 %389  ;;  %v352_v36 = vmul.f32 %v2194_v30, %v346_v29  ;;  %v1919_v20 = vld [vmem:[#allocation2 + $0x48] sm:$0xff] }
 0x2e6   :  { %v396_v25 = vmul.f32 %v2191_v49, %v390_v23  ;;  %v1918_v23 = vld [vmem:[#allocation2 + $0x40] sm:$0xff] }
 0x2e7   :  { %v2033_v26 = vpack.c.bf16 %v492_v22, %v491_v21  ;;  %v570_v21 = vunpack.c.h.b16 %v559_v1 }
 0x2e8   :  { %v1983_v27 = vpack.c.bf16 %v396_v25, %v395_v24  ;;  %v1917_v28 = vld [vmem:[#allocation2 + $0x38] sm:$0xff] }
 0x2e9   :  { %2149 = vst [vmem:[#allocation2 + $0x78] sm:$0xff] %v2033_v26   ;;  %688 = vmatpush.bf16.msra.mxu3 %v1917_v28  ;;  %748 = vmatpush.bf16.msrb.mxu1 %v1917_v28  ;;  %v2480_v51 = vld [vmem:[#allocation2 + $0x68] sm:$0xff]  ;;  %v573_v25 = vpack.c.b16 %v570_v21, %v570_v21  ;;  %v1809_v21 = vld [vmem:[%s2781_s8 + $0x30] sm:$0xff] }
 0x2ea   :  { %2139 = vst [vmem:[#allocation2 + $0x28] sm:$0xff] %v1983_v27   ;;  %v560_v26 = vld [vmem:[%s2786_s9 + $0x8] sm:$0xf] }
 0x2eb   :  { %v571_v27 = vunpack.c.l.b16 %v560_v26 }
 0x2ec   :  { %v368_v31 = vpop.permute.xlu0 %367  ;;  %v438_v52 = vpop.permute.xlu2 %437 }
 0x2ed   :  { %v374_v34 = vmul.f32 %v2193_v3, %v368_v31  ;;  %v344_v35 = vpop.permute.xlu1 %343  ;;  %689 = vmatpush.bf16.msra.mxu3 %v1916_v32  ;;  %749 = vmatpush.bf16.msrb.mxu1 %v1916_v32  ;;  %v446_v59 = vmul.f32 %v2195_v42, %v438_v52  ;;  %v2196_v3 = vld [vmem:[%s2779_s1 + $0x8] ss:$0 sm:$0xff]  ;;  %v574_v29 = vpack.c.b16 %v571_v27, %v571_v27  ;;  %v2198_v27 = vld [vmem:[%s2779_s1 + $0x5] ss:$0 sm:$0xff] }
 0x2ee   :  { %v351_v37 = vmul.f32 %v2194_v30, %v344_v35 }
 0x2ef   :  { %v1973_v38 = vpack.c.bf16 %v374_v34, %v373_v33  ;;  %v738_v33 = vunpack.c.h.b16 %v727_v2 }
 0x2f0   :  { %v1963_v39 = vpack.c.bf16 %v352_v36, %v351_v37  ;;  %v2471_v40 = vld [vmem:[#allocation2 + $0x78] sm:$0xff]  ;;  %v100_v36 = vpop.f32.mrf.mxu0 }
 0x2f1   :  { %2137 = vst [vmem:[#allocation2 + $0x18] sm:$0xff] %v1973_v38   ;;  %v1915_v41 = vld [vmem:[#allocation2 + $0x28] sm:$0xff]  ;;  %701 = vmatpush.bf16.msrb.mxu0 %v2471_v40  ;;  %v741_v34 = vpack.c.b16 %v738_v33, %v738_v33 }
 0x2f2   :  { %2135 = vst [vmem:[#allocation2 + $0x8] sm:$0xff] %v1963_v39   ;;  %690 = vmatpush.bf16.msra.mxu3 %v1915_v41  ;;  %750 = vmatpush.bf16.msrb.mxu1 %v1915_v41 }
 0x2f4   :  { %v440_v43 = vpop.permute.xlu0 %439  ;;  %v502_v16 = vpop.permute.xlu2 %501 }
 0x2f5   :  { %v447_v45 = vmul.f32 %v2195_v42, %v440_v43  ;;  %v442_v46 = vpop.permute.xlu1 %441  ;;  %702 = vmatpush.bf16.msrb.mxu0 %v2477_v44  ;;  %v511_v18 = vmul.f32 %v2196_v3, %v502_v16  ;;  %v1774_v16 = vld [vmem:[%s2780_s6 + $0x28] sm:$0xff] }
 0x2f6   :  { %v448_v48 = vmul.f32 %v2195_v42, %v442_v46  ;;  %691 = vmatpush.bf16.msra.mxu3 %v1914_v47  ;;  %751 = vmatpush.bf16.msrb.mxu1 %v1914_v47 }
 0x2f8   :  { %v2013_v49 = vpack.c.bf16 %v448_v48, %v447_v45  ;;  %v1913_v50 = vld [vmem:[#allocation2 + $0x18] sm:$0xff] }
 0x2f9   :  { %703 = vmatpush.bf16.msrb.mxu0 %v2480_v51  ;;  %v1911_v63 = vld [vmem:[#allocation2 + $0x8] sm:$0xff] }
 0x2fa   :  { %2145 = vst [vmem:[#allocation2 + $0x58] sm:$0xff] %v2013_v49   ;;  %692 = vmatpush.bf16.msra.mxu3 %v1913_v50  ;;  %752 = vmatpush.bf16.msrb.mxu1 %v1913_v50 }
 0x2fc   :  { %v342_v53 = vpop.permute.xlu0 %341 }
 0x2fd   :  { %v350_v56 = vmul.f32 %v2194_v30, %v342_v53  ;;  %v436_v57 = vpop.permute.xlu1 %435  ;;  %704 = vmatpush.bf16.msrb.mxu0 %v1922_v54  ;;  %v728_v30 = vld [vmem:[%s2787_s11 + $0x8] sm:$0xf] }
 0x2fe   :  { %v445_v60 = vmul.f32 %v2195_v42, %v436_v57  ;;  %693 = vmatpush.bf16.msra.mxu3 %v1912_v58  ;;  %753 = vmatpush.bf16.msrb.mxu1 %v1912_v58  ;;  %v739_v31 = vunpack.c.l.b16 %v728_v30  ;;  %v565_v57 = vpop.permute.xlu2 %564 }
 0x2ff   :  { %v1958_v61 = vpack.c.bf16 %v350_v56, %v349_v55 }
 0x300   :  { %v2008_v62 = vpack.c.bf16 %v446_v59, %v445_v60  ;;  %v742_v32 = vpack.c.b16 %v739_v31, %v739_v31 }
 0x301   :  { %1959 = vst [vmem:[#allocation2] sm:$0xff] %v1958_v61   ;;  %v1921_v0 = vld [vmem:[#allocation2 + $0x58] sm:$0xff] }
 0x302   :  { %2144 = vst [vmem:[#allocation2 + $0x50] sm:$0xff] %v2008_v62   ;;  %694 = vmatpush.bf16.msra.mxu3 %v1911_v63  ;;  %705 = vmatpush.bf16.msrb.mxu0 %v1921_v0 }
 0x303   :  { %754 = vmatpush.bf16.msrb.mxu1 %v1911_v63 }
 0x304   :  { %v506_v4 = vpop.permute.xlu0 %505 }
 0x305   :  { %v513_v5 = vmul.f32 %v2196_v3, %v506_v4  ;;  %v508_v6 = vpop.permute.xlu1 %507 }
 0x306   :  { %v514_v10 = vmul.f32 %v2196_v3, %v508_v6 }
 0x308   :  { %v2043_v11 = vpack.c.bf16 %v514_v10, %v513_v5  ;;  %v1910_v12 = vld [vmem:[#allocation2] sm:$0xff] }
 0x309   :  { %v1920_v13 = vld [vmem:[#allocation2 + $0x50] sm:$0xff]  ;;  %695 = vmatpush.bf16.msra.mxu3 %v1910_v12  ;;  %755 = vmatpush.bf16.msrb.mxu1 %v1910_v12 }
 0x30a   :  { %2151 = vst [vmem:[#allocation2 + $0x88] sm:$0xff] %v2043_v11   ;;  %706 = vmatpush.bf16.msrb.mxu0 %v1920_v13  ;;  %v1928_v11 = vld [vmem:[%s2777_s3 + $0x8] sm:$0xff] }
 0x30c   :  { %v504_v17 = vpop.permute.xlu0 %503  ;;  %696 = vmatmul.bf16.vlgmr.msra.gmra.mxu3 %v572_v14  ;;  %756 = vmatmul.bf16.vlgmr.msrb.gmra.mxu1 %v740_v15  ;;  %v1775_v15 = vld [vmem:[%s2780_s6 + $0x30] sm:$0xff] }
 0x30d   :  { %761 = vmatpush.bf16.msrb.mxu3 %v2471_v40  ;;  %v512_v19 = vmul.f32 %v2196_v3, %v504_v17  ;;  %v733_v46 = vpop.permute.xlu1 %732  ;;  %v1773_v17 = vld [vmem:[%s2780_s6 + $0x20] sm:$0xff] }
 0x30e   :  { %707 = vmatpush.bf16.msrb.mxu0 %v1919_v20 }
 0x30f   :  { %v2038_v22 = vpack.c.bf16 %v512_v19, %v511_v18  ;;  %v1776_v18 = vld [vmem:[%s2780_s6 + $0x38] sm:$0xff]  ;;  %v1807_v19 = vld [vmem:[%s2781_s8 + $0x20] sm:$0xff] }
 0x311   :  { %762 = vmatpush.bf16.msrb.mxu3 %v2477_v44  ;;  %2150 = vst [vmem:[#allocation2 + $0x80] sm:$0xff] %v2038_v22   ;;  %v1927_v24 = vld [vmem:[#allocation2 + $0x88] sm:$0xff] }
 0x312   :  { %708 = vmatpush.bf16.msrb.mxu0 %v1918_v23  ;;  %720 = vmatpush.bf16.msrb.mxu2 %v1927_v24  ;;  %v1808_v22 = vld [vmem:[%s2781_s8 + $0x28] sm:$0xff] }
 0x314   :  { %v78_v61 = vpop.permute.xlu0 %77 }
 0x315   :  { %763 = vmatpush.bf16.msrb.mxu3 %v2480_v51  ;;  %709 = vmatmul.bf16.vlgmr.msrb.gmra.mxu0 %v573_v25  ;;  %v819_v12 = vpop.permute.xlu1 %818 }
 0x316   :  { %780 = vmatpush.bf16.msra.mxu0 %v1927_v24 }
 0x318   :  { %v1926_v28 = vld [vmem:[#allocation2 + $0x80] sm:$0xff] }
 0x319   :  { %764 = vmatpush.bf16.msrb.mxu3 %v1922_v54  ;;  %721 = vmatpush.bf16.msrb.mxu2 %v1926_v28 }
 0x31a   :  { %781 = vmatpush.bf16.msra.mxu0 %v1926_v28 }
 0x31c   :  { %1758 = vmatmul.msk.bf16.vlgmr.msrb.gmra.mxu2 %vm309_vm3, %v574_v29 }
 0x31d   :  { %765 = vmatpush.bf16.msrb.mxu3 %v1921_v0  ;;  %v101_v0 = vadd.f32 %v100_v36, %v78_v61 }
 0x321   :  { %766 = vmatpush.bf16.msrb.mxu3 %v1920_v13 }
 0x325   :  { %767 = vmatpush.bf16.msrb.mxu3 %v1919_v20  ;;  %1759 = vmatmul.msk.bf16.vlgmr.msra.gmra.mxu0 %vm309_vm3, %v742_v32  ;;  %v1810_v20 = vld [vmem:[%s2781_s8 + $0x38] sm:$0xff]  ;;  %v2199_v32 = vld [vmem:[%s2779_s1] ss:$0 sm:$0xff] }
 0x329   :  { %768 = vmatpush.bf16.msrb.mxu3 %v1918_v23  ;;  %v2197_v23 = vld [vmem:[%s2779_s1 + $0x8] ss:$0 sm:$0xff] }
 0x32c   :  { %769 = vmatmul.bf16.vlgmr.msrb.gmra.mxu3 %v741_v34 }
 0x389   :  { %v757_v35 = vpop.f32.mrf.mxu1 }
 0x38a   :  { %v758_v47 = vadd.f32 %v757_v35, %v733_v46 }
 0x38f   :  { %v697_v37 = vpop.f32.mrf.mxu3 }
 0x390   :  { %v698_v58 = vadd.f32 %v697_v37, %v565_v57 }
 0x391   :  { %v759_v38 = vpop.f32.mrf.mxu1 }
 0x392   :  { %v710_v39 = vpop.f32.mrf.mxu0 }
 0x393   :  { %v711_v60 = vadd.f32 %v710_v39, %v698_v58  ;;  %v2200_v39 = vld [vmem:[%s2779_s1 + $0x7] ss:$0 sm:$0xff] }
 0x397   :  { %v699_v40 = vpop.f32.mrf.mxu3 }
 0x398   :  { %v2201_v40 = vld [vmem:[%s2779_s1 + $0x6] ss:$0 sm:$0xff] }
 0x39a   :  { %v712_v41 = vpop.f32.mrf.mxu0 }
 0x39f   :  { %v723_v42 = vpop.f32.mrf.mxu2 }
 0x3a0   :  { %v724_v62 = vadd.f32 %v723_v42, %v711_v60 }
 0x3a2   :  { %v783_v43 = vpop.f32.mrf.mxu0  ;;  %v801_v3 = vadd.f32 %v724_v62, %v101_v0  ;;  %v1934_v0 = vld [vmem:[%s2782_s5 + $0x18] sm:$0xff] }
 0x3a7   :  { %v725_v44 = vpop.f32.mrf.mxu2 }
 0x3aa   :  { %v785_v45 = vpop.f32.mrf.mxu0 }
 0x3af   :  { %v770_v48 = vpop.f32.mrf.mxu3 }
 0x3b0   :  { %v771_v49 = vadd.f32 %v770_v48, %v758_v47  ;;  %v2202_v47 = vld [vmem:[%s2779_s1 + $0x3] ss:$0 sm:$0xff]  ;;  %v2203_v48 = vld [vmem:[%s2779_s1 + $0x2] ss:$0 sm:$0xff] }
 0x3b2   :  { %v784_v50 = vadd.f32 %v783_v43, %v771_v49 }
 0x3b4   :  { %v787_v51 = vadd.f32 2.0, %v784_v50 }
 0x3b6   :  { %v788_v52 = vand.u32 2147483647, %v787_v51  ;;  %vm794_vm4 = vcmp.ge.f32.partialorder %v787_v51, 0.0  ;;  %v797_v4 = vmin.f32 %v787_v51, 0.0 }
 0x3b7   :  { %v772_v53 = vpop.f32.mrf.mxu3 }
 0x3b8   :  { %v789_v54 = vsub.f32 0.0, %v788_v52 }
 0x3ba   :  { %v790_v55 = vmul.f32 1.442695, %v789_v54 }
 0x3bc   :  { %2213 = vpow2.f32 %v790_v55 }
 0x3c2   :  { %v2214_v56 = vpop.eup %2213 }
 0x3c3   :  { %v792_v59 = vadd.f32 1.0, %v2214_v56 }
 0x3c5   :  { %2215 = vrcp.f32 %v792_v59 }
 0x3c6   :  { %2217 = vlog2.f32 %v792_v59 }
 0x3cb   :  { %v2216_v63 = vpop.eup %2215 }
 0x3cc   :  { %v2218_v1 = vpop.eup %2217  ;;  %v795_v2 = vmul.f32 %v2216_v63, %v2214_v56  ;;  %v2204_v56 = vld [vmem:[%s2779_s1 + $0x1] ss:$0 sm:$0xff] }
 0x3cd   :  { %v799_v5 = vmul.f32 0.6931472, %v2218_v1 }
 0x3ce   :  { %v796_v6 = vsel %vm794_vm4, %v2216_v63, %v795_v2  ;;  %v1933_v63 = vld [vmem:[%s2782_s5 + $0x10] sm:$0xff] }
 0x3cf   :  { %v2504_v7 = vsub.f32 %v797_v4, %v799_v5  ;;  %v802_v9 = vmul.f32 %v801_v3, %v796_v6 }
 0x3d1   :  { %v812_v10 = vpack.c.bf16 %v802_v9, %v2322_v8 }
 0x3d3   :  { %841 = vmatpush.bf16.msra.mxu2 %v812_v10 }
 0x3d6   :  { %1768 = vmatmul.msk.bf16.vlgmr.msra.gmra.mxu2 %vm85_vm0, %v1928_v11 }
 0x459   :  { %v843_v13 = vpop.f32.mrf.mxu2 }
 0x45a   :  { %v2511_v14 = vadd.f32 %v843_v13, %v819_v12 }
 0x45c   :  { %892 = vrot.lane.b32.xlu1 %v2511_v14, %s2230_s24  ;;  %885 = vrot.lane.b32.xlu0 %v2511_v14, %s2227_s21  ;;  %v876_v8 = vpack.c.bf16 %v2511_v14, %v2511_v14  ;;  %1629 = vst [vmem:[%s2788_s13] sm:$0xff] %v2511_v14 }
 0x45d   :  { %899 = vrot.lane.b32.xlu2 %v2511_v14, %s2228_s22 }
 0x45e   :  { %877 = vst [vmem:[#allocation2 + $0x10] sm:$0xf] %v876_v8 }
 0x464   :  { %869 = vrot.lane.b32.xlu1 %v2511_v14, %s2231_s25  ;;  %862 = vrot.lane.b32.xlu0 %v2511_v14, %s2229_s23 }
 0x465   :  { %878 = vrot.lane.b32.xlu2 %v2511_v14, %s2226_s0 }
 0x46c   :  { %937 = vperm.xlu1 %2179, %v1775_v15   ;;  %855 = vrot.lane.b32.xlu0 %v2511_v14, %s2232_s28 }
 0x46d   :  { %848 = vrot.lane.b32.xlu2 %v2511_v14, %s2233_s29 }
 0x474   :  { %932 = vperm.xlu1 %2179, %v1774_v16   ;;  %927 = vperm.xlu0 %2178, %v1773_v17  }
 0x475   :  { %942 = vperm.xlu2 %2180, %v1776_v18  }
 0x47c   :  { %1028 = vperm.xlu1 %2179, %v1807_v19   ;;  %1043 = vperm.xlu0 %2178, %v1810_v20  }
 0x47d   :  { %1038 = vperm.xlu2 %2180, %v1809_v21   ;;  %v1935_v21 = vld [vmem:[%s2783_s7 + $0x10] sm:$0xff] }
 0x485   :  { %1033 = vperm.xlu2 %2180, %v1808_v22   ;;  %v1936_v22 = vld [vmem:[%s2783_s7 + $0x18] sm:$0xff] }
 0x4b7   :  { %v900_v24 = vpop.permute.xlu2 %899 }
 0x4b8   :  { %v903_v25 = vmul.f32 %v2197_v23, %v900_v24 }
 0x4ba   :  { %v904_v26 = vpack.c.bf16 %v903_v25, %v903_v25 }
 0x4bc   :  { %905 = vst [vmem:[#allocation2 + $0x20] sm:$0xf] %v904_v26 }
 0x4bf   :  { %v879_v28 = vpop.permute.xlu2 %878 }
 0x4c0   :  { %v882_v29 = vmul.f32 %v2198_v27, %v879_v28 }
 0x4c2   :  { %v883_v30 = vpack.c.bf16 %v882_v29, %v882_v29 }
 0x4c3   :  { %v914_v31 = vld [vmem:[#allocation2 + $0x20] sm:$0xf] }
 0x4c4   :  { %884 = vst [vmem:[#allocation2 + $0x14] sm:$0xf] %v883_v30  ;;  %v972_v33 = vunpack.c.l.b16 %v914_v31 }
 0x4c6   :  { %v977_v34 = vpack.c.b16 %v972_v33, %v972_v33 }
 0x4c7   :  { %v849_v35 = vpop.permute.xlu2 %848 }
 0x4c8   :  { %v852_v36 = vmul.f32 %v2199_v32, %v849_v35  ;;  %v989_v37 = vsel %vm242_vm1, %v977_v34, 0 }
 0x4c9   :  { %994 = vmatpush.bf16.msrb.mxu0 %v989_v37 }
 0x4ca   :  { %v853_v38 = vpack.c.bf16 %v852_v36, %v852_v36 }
 0x4cb   :  { %v1931_v59 = vld [vmem:[#allocation2 + $0x10] sm:$0xff] }
 0x4cc   :  { %854 = vst [vmem:[#allocation2] sm:$0xf] %v853_v38 }
 0x4ce   :  { %v893_v41 = vpop.permute.xlu1 %892  ;;  %v886_v42 = vpop.permute.xlu0 %885 }
 0x4cf   :  { %v896_v43 = vmul.f32 %v2200_v39, %v893_v41  ;;  %v889_v44 = vmul.f32 %v2201_v40, %v886_v42  ;;  %v943_v5 = vpop.permute.xlu2 %942  ;;  %v1899_v41 = vld [vmem:[%s2784_s12 + $0x8] sm:$0xff] }
 0x4d0   :  { %v1823_v42 = vld [vmem:[%s2785_s10 + $0x8] sm:$0xff] }
 0x4d1   :  { %v897_v45 = vpack.c.bf16 %v896_v43, %v896_v43  ;;  %v890_v46 = vpack.c.bf16 %v889_v44, %v889_v44  ;;  %v1763_v43 = vld [vmem:[%s2778_s4 + $0x18] sm:$0xff] }
 0x4d3   :  { %898 = vst [vmem:[#allocation2 + $0x1c] sm:$0xf] %v897_v45 }
 0x4d4   :  { %891 = vst [vmem:[#allocation2 + $0x18] sm:$0xf] %v890_v46 }
 0x4d6   :  { %v870_v49 = vpop.permute.xlu1 %869  ;;  %v863_v50 = vpop.permute.xlu0 %862 }
 0x4d7   :  { %v873_v51 = vmul.f32 %v2202_v47, %v870_v49  ;;  %v866_v52 = vmul.f32 %v2203_v48, %v863_v50  ;;  %v1039_v23 = vpop.permute.xlu2 %1038  ;;  %v2207_v47 = vld [vmem:[%s2779_s1 + $0x3] ss:$0 sm:$0xff] }
 0x4d9   :  { %v874_v53 = vpack.c.bf16 %v873_v51, %v873_v51  ;;  %v867_v54 = vpack.c.bf16 %v866_v52, %v866_v52 }
 0x4db   :  { %875 = vst [vmem:[#allocation2 + $0xc] sm:$0xf] %v874_v53  ;;  %v1932_v55 = vld [vmem:[#allocation2 + $0x18] sm:$0xff] }
 0x4dc   :  { %868 = vst [vmem:[#allocation2 + $0x8] sm:$0xf] %v867_v54  ;;  %995 = vmatpush.bf16.msrb.mxu0 %v1932_v55  ;;  %v2208_v54 = vld [vmem:[%s2779_s1 + $0x7] ss:$0 sm:$0xff] }
 0x4de   :  { %v856_v57 = vpop.permute.xlu0 %855  ;;  %v938_v3 = vpop.permute.xlu1 %937 }
 0x4df   :  { %v859_v58 = vmul.f32 %v2204_v56, %v856_v57  ;;  %v1034_v28 = vpop.permute.xlu2 %1033 }
 0x4e0   :  { %996 = vmatpush.bf16.msrb.mxu0 %v1931_v59 }
 0x4e1   :  { %v860_v60 = vpack.c.bf16 %v859_v58, %v859_v58 }
 0x4e3   :  { %861 = vst [vmem:[#allocation2 + $0x4] sm:$0xf] %v860_v60  ;;  %v1930_v61 = vld [vmem:[#allocation2 + $0x8] sm:$0xff] }
 0x4e4   :  { %997 = vmatpush.bf16.msrb.mxu0 %v1930_v61  ;;  %v2205_v61 = vld [vmem:[%s2779_s1 + $0x6] ss:$0 sm:$0xff] }
 0x4e6   :  { %v933_v9 = vpop.permute.xlu1 %932  ;;  %v928_v13 = vpop.permute.xlu0 %927 }
 0x4ea   :  { %v1929_v62 = vld [vmem:[#allocation2] sm:$0xff] }
 0x4eb   :  { %998 = vmatpush.bf16.msrb.mxu0 %v1929_v62  ;;  %v2209_v62 = vld [vmem:[%s2779_s1 + $0x2] ss:$0 sm:$0xff] }
 0x4ee   :  { %1801 = vmatmul.msk.bf16.vlgmr.msrb.gmra.mxu0 %vm235_vm2, %v1933_v63  ;;  %v1029_v24 = vpop.permute.xlu1 %1028  ;;  %v1044_v35 = vpop.permute.xlu0 %1043 }
 0x4fe   :  { %1802 = vmatmul.msk.bf16.gmra.mxu0 %vm235_vm2, %v1934_v0 }
 0x56b   :  { %v1000_v1 = vpop.f32.mrf.mxu0 }
 0x56c   :  { %v1001_v8 = vadd.f32 %v1000_v1, %v928_v13 }
 0x56e   :  { %v1010_v19 = vmax.f32 %v1001_v8, 0.0 }
 0x573   :  { %v1002_v2 = vpop.f32.mrf.mxu0 }
 0x574   :  { %v1003_v11 = vadd.f32 %v1002_v2, %v933_v9 }
 0x576   :  { %v1011_v17 = vmax.f32 %v1003_v11, 0.0 }
 0x578   :  { %v1019_v20 = vpack.c.bf16 %v1011_v17, %v1010_v19 }
 0x57b   :  { %v1005_v4 = vpop.f32.mrf.mxu0 }
 0x57c   :  { %v1006_v6 = vadd.f32 %v1005_v4, %v938_v3 }
 0x57e   :  { %v1012_v15 = vmax.f32 %v1006_v6, 0.0 }
 0x583   :  { %v1007_v10 = vpop.f32.mrf.mxu0 }
 0x584   :  { %v1008_v12 = vadd.f32 %v1007_v10, %v943_v5 }
 0x586   :  { %v1013_v16 = vmax.f32 %v1008_v12, 0.0 }
 0x588   :  { %v1020_v18 = vpack.c.bf16 %v1013_v16, %v1012_v15  ;;  %v2206_v16 = vld [vmem:[%s2779_s1 + $0x1] ss:$0 sm:$0xff] }
 0x58a   :  { %1068 = vmatpush.bf16.msra.mxu1 %v1020_v18 }
 0x58e   :  { %1069 = vmatpush.bf16.msra.mxu1 %v1019_v20 }
 0x591   :  { %1819 = vmatmul.msk.bf16.vlgmr.msra.gmra.mxu1 %vm309_vm3, %v1935_v21 }
 0x5a1   :  { %1820 = vmatmul.msk.bf16.gmra.mxu1 %vm309_vm3, %v1936_v22 }
 0x60e   :  { %v1071_v25 = vpop.f32.mrf.mxu1 }
 0x60f   :  { %v1072_v26 = vadd.f32 %v1071_v25, %v1029_v24 }
 0x611   :  { %v1081_v27 = vmax.f32 %v1072_v26, 0.0 }
 0x613   :  { %1203 = vrot.lane.b32.xlu2 %v1081_v27, %s2227_s21  ;;  %1225 = vrot.lane.b32.xlu0 %v1081_v27, %s2230_s24 }
 0x614   :  { %1151 = vrot.lane.b32.xlu1 %v1081_v27, %s2231_s25 }
 0x616   :  { %v1073_v29 = vpop.f32.mrf.mxu1 }
 0x617   :  { %v1074_v30 = vadd.f32 %v1073_v29, %v1034_v28 }
 0x619   :  { %v1082_v31 = vmax.f32 %v1074_v30, 0.0  ;;  %v2210_v30 = vld [vmem:[%s2779_s1 + $0x5] ss:$0 sm:$0xff] }
 0x61b   :  { %v2088_v32 = vpack.c.bf16 %v1082_v31, %v1081_v27  ;;  %1107 = vrot.lane.b32.xlu2 %v1081_v27, %s2232_s28  ;;  %1129 = vrot.lane.b32.xlu0 %v1081_v27, %s2229_s23 }
 0x61c   :  { %1227 = vrot.lane.b32.xlu1 %v1082_v31, %s2230_s24 }
 0x61d   :  { %2159 = vst [vmem:[#allocation2 + $0x40] sm:$0xff] %v2088_v32  }
 0x61e   :  { %v1076_v33 = vpop.f32.mrf.mxu1 }
 0x61f   :  { %v1077_v34 = vadd.f32 %v1076_v33, %v1039_v23 }
 0x621   :  { %v1083_v38 = vmax.f32 %v1077_v34, 0.0 }
 0x623   :  { %1153 = vrot.lane.b32.xlu2 %v1082_v31, %s2231_s25  ;;  %1205 = vrot.lane.b32.xlu0 %v1082_v31, %s2227_s21 }
 0x624   :  { %1131 = vrot.lane.b32.xlu1 %v1082_v31, %s2229_s23 }
 0x626   :  { %v1078_v36 = vpop.f32.mrf.mxu1 }
 0x627   :  { %v1079_v37 = vadd.f32 %v1078_v36, %v1044_v35 }
 0x629   :  { %v1084_v39 = vmax.f32 %v1079_v37, 0.0 }
 0x62b   :  { %v2093_v40 = vpack.c.bf16 %v1084_v39, %v1083_v38  ;;  %1229 = vrot.lane.b32.xlu2 %v1083_v38, %s2230_s24  ;;  %1155 = vrot.lane.b32.xlu0 %v1083_v38, %s2231_s25 }
 0x62c   :  { %1207 = vrot.lane.b32.xlu1 %v1083_v38, %s2227_s21 }
 0x62d   :  { %2160 = vst [vmem:[#allocation2 + $0x48] sm:$0xff] %v2093_v40  }
 0x633   :  { %1133 = vrot.lane.b32.xlu2 %v1083_v38, %s2229_s23  ;;  %1185 = vrot.lane.b32.xlu0 %v1083_v38, %s2226_s0 }
 0x634   :  { %1111 = vrot.lane.b32.xlu1 %v1083_v38, %s2232_s28 }
 0x63b   :  { %1209 = vrot.lane.b32.xlu2 %v1084_v39, %s2227_s21  ;;  %1231 = vrot.lane.b32.xlu0 %v1084_v39, %s2230_s24 }
 0x63c   :  { %1157 = vrot.lane.b32.xlu1 %v1084_v39, %s2231_s25 }
 0x643   :  { %1113 = vrot.lane.b32.xlu2 %v1084_v39, %s2232_s28  ;;  %1135 = vrot.lane.b32.xlu0 %v1084_v39, %s2229_s23 }
 0x644   :  { %1181 = vrot.lane.b32.xlu1 %v1081_v27, %s2226_s0 }
 0x64b   :  { %1183 = vrot.lane.b32.xlu2 %v1082_v31, %s2226_s0  ;;  %1109 = vrot.lane.b32.xlu0 %v1082_v31, %s2232_s28 }
 0x64c   :  { %1187 = vrot.lane.b32.xlu1 %v1084_v39, %s2226_s0 }
 0x653   :  { %1085 = vrot.lane.b32.xlu2 %v1081_v27, %s2233_s29  ;;  %1089 = vrot.lane.b32.xlu0 %v1083_v38, %s2233_s29 }
 0x654   :  { %1091 = vrot.lane.b32.xlu1 %v1084_v39, %s2233_s29 }
 0x65b   :  { %1253 = vrot.lane.b32.xlu2 %v1084_v39, %s2228_s22  ;;  %1087 = vrot.lane.b32.xlu0 %v1082_v31, %s2233_s29 }
 0x65c   :  { %1251 = vrot.lane.b32.xlu1 %v1083_v38, %s2228_s22 }
 0x663   :  { %1482 = vperm.xlu2 %2180, %v1899_v41   ;;  %1247 = vrot.lane.b32.xlu0 %v1081_v27, %s2228_s22 }
 0x664   :  { %1249 = vrot.lane.b32.xlu1 %v1082_v31, %s2228_s22 }
 0x66b   :  { %1312 = vperm.xlu0 %2178, %v1823_v42  }
 0x66c   :  { %823 = vperm.xlu1 %2179, %v1763_v43  }
 0x66d   :  { %v1204_v44 = vpop.permute.xlu2 %1203 }
 0x66e   :  { %v1213_v0 = vmul.f32 %v2205_v61, %v1204_v44 }
 0x675   :  { %v2641_v45 = vpop.permute.xlu2 %1107 }
 0x676   :  { %v1117_v44 = vmul.f32 %v2206_v16, %v2641_v45  ;;  %v2211_v45 = vld [vmem:[%s2779_s1] ss:$0 sm:$0xff] }
 0x67d   :  { %v1154_v46 = vpop.permute.xlu2 %1153 }
 0x67e   :  { %v1162_v51 = vmul.f32 %v2207_v47, %v1154_v46 }
 0x685   :  { %v1226_v48 = vpop.permute.xlu0 %1225  ;;  %v1230_v49 = vpop.permute.xlu2 %1229 }
 0x686   :  { %v1152_v50 = vpop.permute.xlu1 %1151  ;;  %v1235_v57 = vmul.f32 %v2208_v54, %v1226_v48  ;;  %v1237_v23 = vmul.f32 %v2208_v54, %v1230_v49 }
 0x687   :  { %v1161_v52 = vmul.f32 %v2207_v47, %v1152_v50 }
 0x689   :  { %v2078_v53 = vpack.c.bf16 %v1162_v51, %v1161_v52 }
 0x68b   :  { %2157 = vst [vmem:[#allocation2 + $0x30] sm:$0xff] %v2078_v53  }
 0x68d   :  { %v1130_v55 = vpop.permute.xlu0 %1129  ;;  %v1134_v59 = vpop.permute.xlu2 %1133 }
 0x68e   :  { %v1228_v56 = vpop.permute.xlu1 %1227  ;;  %v1139_v3 = vmul.f32 %v2209_v62, %v1130_v55  ;;  %v1141_v33 = vmul.f32 %v2209_v62, %v1134_v59 }
 0x68f   :  { %v1236_v58 = vmul.f32 %v2208_v54, %v1228_v56 }
 0x691   :  { %v2118_v60 = vpack.c.bf16 %v1236_v58, %v1235_v57 }
 0x692   :  { %v1943_v48 = vld [vmem:[#allocation2 + $0x30] sm:$0xff] }
 0x693   :  { %2165 = vst [vmem:[#allocation2 + $0x70] sm:$0xff] %v2118_v60  }
 0x695   :  { %v1206_v63 = vpop.permute.xlu0 %1205  ;;  %v1210_v9 = vpop.permute.xlu2 %1209 }
 0x696   :  { %v1214_v1 = vmul.f32 %v2205_v61, %v1206_v63  ;;  %v1132_v2 = vpop.permute.xlu1 %1131  ;;  %v1216_v12 = vmul.f32 %v2205_v61, %v1210_v9 }
 0x697   :  { %v1140_v4 = vmul.f32 %v2209_v62, %v1132_v2 }
 0x698   :  { %v2108_v5 = vpack.c.bf16 %v1214_v1, %v1213_v0  ;;  %v2212_v1 = vld [vmem:[%s2779_s1 + $0x8] ss:$0 sm:$0xff] }
 0x699   :  { %v2068_v6 = vpack.c.bf16 %v1140_v4, %v1139_v3 }
 0x69a   :  { %2163 = vst [vmem:[#allocation2 + $0x60] sm:$0xff] %v2108_v5   ;;  %v2664_v43 = vld [vmem:[#allocation2 + $0x70] sm:$0xff] }
 0x69b   :  { %2155 = vst [vmem:[#allocation2 + $0x20] sm:$0xff] %v2068_v6  }
 0x69d   :  { %v1156_v10 = vpop.permute.xlu0 %1155  ;;  %v1114_v15 = vpop.permute.xlu2 %1113 }
 0x69e   :  { %v1208_v11 = vpop.permute.xlu1 %1207  ;;  %v1120_v19 = vmul.f32 %v2206_v16, %v1114_v15  ;;  %v1163_v26 = vmul.f32 %v2207_v47, %v1156_v10 }
 0x69f   :  { %v1215_v13 = vmul.f32 %v2205_v61, %v1208_v11 }
 0x6a1   :  { %v2113_v8 = vpack.c.bf16 %v1216_v12, %v1215_v13  ;;  %v2674_v57 = vld [vmem:[#allocation2 + $0x60] sm:$0xff] }
 0x6a2   :  { %v1941_v60 = vld [vmem:[#allocation2 + $0x20] sm:$0xff] }
 0x6a3   :  { %2164 = vst [vmem:[#allocation2 + $0x68] sm:$0xff] %v2113_v8  }
 0x6a5   :  { %v1186_v17 = vpop.permute.xlu0 %1185  ;;  %v1184_v31 = vpop.permute.xlu2 %1183 }
 0x6a6   :  { %v1112_v18 = vpop.permute.xlu1 %1111  ;;  %v1192_v36 = vmul.f32 %v2210_v30, %v1184_v31  ;;  %v1193_v49 = vmul.f32 %v2210_v30, %v1186_v17  ;;  %v1821_v17 = vld [vmem:[%s2786_s9 + $0xc] sm:$0xff] }
 0x6a7   :  { %v1119_v20 = vmul.f32 %v2206_v16, %v1112_v18  ;;  %v2694_v18 = vld [vmem:[%s2787_s11 + $0xc] sm:$0xff] }
 0x6a9   :  { %v2063_v21 = vpack.c.bf16 %v1120_v19, %v1119_v20 }
 0x6ab   :  { %2154 = vst [vmem:[#allocation2 + $0x18] sm:$0xff] %v2063_v21  }
 0x6ad   :  { %v1232_v22 = vpop.permute.xlu0 %1231  ;;  %v1086_v55 = vpop.permute.xlu2 %1085 }
 0x6ae   :  { %v1238_v24 = vmul.f32 %v2208_v54, %v1232_v22  ;;  %v1158_v25 = vpop.permute.xlu1 %1157  ;;  %v2668_v54 = vld [vmem:[#allocation2 + $0x68] sm:$0xff]  ;;  %v1095_v4 = vmul.f32 %v2211_v45, %v1086_v55  ;;  %v2697_v22 = vld [vmem:[#allocation2 + $0x40] sm:$0xff]  ;;  %v50_v55 = vld [vmem:[%s2789_s2 + $0x18] sm:$0xff] }
 0x6af   :  { %v1164_v27 = vmul.f32 %v2207_v47, %v1158_v25 }
 0x6b0   :  { %v2123_v28 = vpack.c.bf16 %v1238_v24, %v1237_v23  ;;  %v1317_v23 = vunpack.c.l.b16 %v1821_v17  ;;  %v1487_v24 = vunpack.c.l.b16 %v2694_v18 }
 0x6b1   :  { %v2083_v29 = vpack.c.bf16 %v1164_v27, %v1163_v26  ;;  %v1318_v26 = vunpack.c.h.b16 %v1821_v17 }
 0x6b2   :  { %2166 = vst [vmem:[#allocation2 + $0x78] sm:$0xff] %v2123_v28   ;;  %v1940_v63 = vld [vmem:[#allocation2 + $0x18] sm:$0xff]  ;;  %v1320_v31 = vpack.c.b16 %v1317_v23, %v1317_v23 }
 0x6b3   :  { %2158 = vst [vmem:[#allocation2 + $0x38] sm:$0xff] %v2083_v29  }
 0x6b5   :  { %v1136_v32 = vpop.permute.xlu0 %1135  ;;  %v1254_v2 = vpop.permute.xlu2 %1253 }
 0x6b6   :  { %v1142_v34 = vmul.f32 %v2209_v62, %v1136_v32  ;;  %v1182_v35 = vpop.permute.xlu1 %1181  ;;  %v1260_v11 = vmul.f32 %v2212_v1, %v1254_v2  ;;  %v1490_v32 = vpack.c.b16 %v1487_v24, %v1487_v24 }
 0x6b7   :  { %v1191_v37 = vmul.f32 %v2210_v30, %v1182_v35  ;;  %v61_v35 = vld [vmem:[%s2789_s2 + $0x70] sm:$0xff] }
 0x6b8   :  { %v2073_v38 = vpack.c.bf16 %v1142_v34, %v1141_v33  ;;  %v1321_v33 = vpack.c.b16 %v1318_v26, %v1318_v26  ;;  %v1822_v34 = vld [vmem:[%s2786_s9 + $0x14] sm:$0xf] }
 0x6b9   :  { %v2098_v39 = vpack.c.bf16 %v1192_v36, %v1191_v37  ;;  %v2661_v40 = vld [vmem:[#allocation2 + $0x78] sm:$0xff]  ;;  %v60_v36 = vld [vmem:[%s2789_s2 + $0x68] sm:$0xff]  ;;  %v1319_v37 = vunpack.c.l.b16 %v1822_v34 }
 0x6ba   :  { %2156 = vst [vmem:[#allocation2 + $0x28] sm:$0xff] %v2073_v38   ;;  %v1944_v41 = vld [vmem:[#allocation2 + $0x38] sm:$0xff]  ;;  %1449 = vmatpush.bf16.msra.mxu3 %v2661_v40  ;;  %v59_v38 = vld [vmem:[%s2789_s2 + $0x60] sm:$0xff] }
 0x6bb   :  { %2161 = vst [vmem:[#allocation2 + $0x50] sm:$0xff] %v2098_v39   ;;  %1436 = vmatpush.bf16.msrb.mxu2 %v1944_v41  ;;  %1498 = vmatpush.bf16.msra.mxu0 %v1944_v41  ;;  %v1322_v41 = vpack.c.b16 %v1319_v37, %v1319_v37 }
 0x6bd   :  { %v1110_v42 = vpop.permute.xlu0 %1109 }
 0x6be   :  { %v1118_v46 = vmul.f32 %v2206_v16, %v1110_v42  ;;  %v1188_v47 = vpop.permute.xlu1 %1187  ;;  %1450 = vmatpush.bf16.msra.mxu3 %v2664_v43  ;;  %v2686_v16 = vld [vmem:[#allocation2 + $0x48] sm:$0xff]  ;;  %v57_v42 = vld [vmem:[%s2789_s2 + $0x50] sm:$0xff] }
 0x6bf   :  { %v1194_v50 = vmul.f32 %v2210_v30, %v1188_v47  ;;  %1437 = vmatpush.bf16.msrb.mxu2 %v1943_v48  ;;  %1499 = vmatpush.bf16.msra.mxu0 %v1943_v48  ;;  %v62_v30 = vld [vmem:[%s2789_s2 + $0x78] sm:$0xff]  ;;  %v55_v48 = vld [vmem:[%s2789_s2 + $0x40] sm:$0xff] }
 0x6c0   :  { %v2058_v51 = vpack.c.bf16 %v1118_v46, %v1117_v44  ;;  %v1898_v44 = vld [vmem:[%s2787_s11 + $0x14] sm:$0xf]  ;;  %v56_v46 = vld [vmem:[%s2789_s2 + $0x48] sm:$0xff] }
 0x6c1   :  { %v2103_v52 = vpack.c.bf16 %v1194_v50, %v1193_v49  ;;  %v1942_v53 = vld [vmem:[#allocation2 + $0x28] sm:$0xff]  ;;  %v1489_v47 = vunpack.c.l.b16 %v1898_v44  ;;  %v54_v49 = vld [vmem:[%s2789_s2 + $0x38] sm:$0xff] }
 0x6c2   :  { %2153 = vst [vmem:[#allocation2 + $0x10] sm:$0xff] %v2058_v51   ;;  %1451 = vmatpush.bf16.msra.mxu3 %v2668_v54  ;;  %v2683_v10 = vld [vmem:[#allocation2 + $0x50] sm:$0xff] }
 0x6c3   :  { %2162 = vst [vmem:[#allocation2 + $0x58] sm:$0xff] %v2103_v52   ;;  %1438 = vmatpush.bf16.msrb.mxu2 %v1942_v53  ;;  %1500 = vmatpush.bf16.msra.mxu0 %v1942_v53  ;;  %v1492_v51 = vpack.c.b16 %v1489_v47, %v1489_v47  ;;  %v53_v52 = vld [vmem:[%s2789_s2 + $0x30] sm:$0xff]  ;;  %v52_v53 = vld [vmem:[%s2789_s2 + $0x28] sm:$0xff] }
 0x6c5   :  { %v1090_v56 = vpop.permute.xlu0 %1089 }
 0x6c6   :  { %v1097_v58 = vmul.f32 %v2211_v45, %v1090_v56  ;;  %v1092_v59 = vpop.permute.xlu1 %1091  ;;  %1452 = vmatpush.bf16.msra.mxu3 %v2674_v57  ;;  %v49_v56 = vld [vmem:[%s2789_s2 + $0x10] sm:$0xff] }
 0x6c7   :  { %v1098_v61 = vmul.f32 %v2211_v45, %v1092_v59  ;;  %1439 = vmatpush.bf16.msrb.mxu2 %v1941_v60  ;;  %1501 = vmatpush.bf16.msra.mxu0 %v1941_v60  ;;  %v47_v60 = vld [vmem:[%s2789_s2] sm:$0xff] }
 0x6c9   :  { %v2053_v62 = vpack.c.bf16 %v1098_v61, %v1097_v58  ;;  %v1939_v9 = vld [vmem:[#allocation2 + $0x10] sm:$0xff]  ;;  %v48_v58 = vld [vmem:[%s2789_s2 + $0x8] sm:$0xff] }
 0x6ca   :  { %v2677_v0 = vld [vmem:[#allocation2 + $0x58] sm:$0xff] }
 0x6cb   :  { %2152 = vst [vmem:[#allocation2 + $0x8] sm:$0xff] %v2053_v62   ;;  %1440 = vmatpush.bf16.msrb.mxu2 %v1940_v63  ;;  %1453 = vmatpush.bf16.msra.mxu3 %v2677_v0 }
 0x6cc   :  { %1502 = vmatpush.bf16.msra.mxu0 %v1940_v63  ;;  %v845_v63 = vpop.f32.mrf.mxu2 }
 0x6cd   :  { %v1088_v3 = vpop.permute.xlu0 %1087 }
 0x6ce   :  { %v1096_v5 = vmul.f32 %v2211_v45, %v1088_v3  ;;  %v1252_v6 = vpop.permute.xlu1 %1251 }
 0x6cf   :  { %v1259_v12 = vmul.f32 %v2212_v1, %v1252_v6  ;;  %1441 = vmatpush.bf16.msrb.mxu2 %v1939_v9  ;;  %1454 = vmatpush.bf16.msra.mxu3 %v2683_v10 }
 0x6d0   :  { %v2048_v13 = vpack.c.bf16 %v1096_v5, %v1095_v4  ;;  %1503 = vmatpush.bf16.msra.mxu0 %v1939_v9 }
 0x6d1   :  { %v2133_v8 = vpack.c.bf16 %v1260_v11, %v1259_v12  ;;  %v1483_v12 = vpop.permute.xlu2 %1482 }
 0x6d2   :  { %2049 = vst [vmem:[#allocation2] sm:$0xff] %v2048_v13   ;;  %v1938_v15 = vld [vmem:[#allocation2 + $0x8] sm:$0xff] }
 0x6d3   :  { %2168 = vst [vmem:[#allocation2 + $0x88] sm:$0xff] %v2133_v8   ;;  %1442 = vmatpush.bf16.msrb.mxu2 %v1938_v15  ;;  %1455 = vmatpush.bf16.msra.mxu3 %v2686_v16 }
 0x6d4   :  { %1504 = vmatpush.bf16.msra.mxu0 %v1938_v15 }
 0x6d5   :  { %v1248_v19 = vpop.permute.xlu0 %1247 }
 0x6d6   :  { %v1257_v20 = vmul.f32 %v2212_v1, %v1248_v19  ;;  %v1250_v21 = vpop.permute.xlu1 %1249 }
 0x6d7   :  { %v1258_v25 = vmul.f32 %v2212_v1, %v1250_v21  ;;  %1456 = vmatpush.bf16.msra.mxu3 %v2697_v22 }
 0x6d9   :  { %v2128_v27 = vpack.c.bf16 %v1258_v25, %v1257_v20  ;;  %v1937_v28 = vld [vmem:[#allocation2] sm:$0xff] }
 0x6da   :  { %v1954_v29 = vld [vmem:[#allocation2 + $0x88] sm:$0xff]  ;;  %1443 = vmatpush.bf16.msrb.mxu2 %v1937_v28  ;;  %1505 = vmatpush.bf16.msra.mxu0 %v1937_v28 }
 0x6db   :  { %2167 = vst [vmem:[#allocation2 + $0x80] sm:$0xff] %v2128_v27   ;;  %1468 = vmatpush.bf16.msrb.mxu1 %v1954_v29  ;;  %1530 = vmatpush.bf16.msrb.mxu3 %v1954_v29 }
 0x6dc   :  { %1457 = vmatmul.bf16.vlgmr.msra.gmra.mxu3 %v1321_v33 }
 0x6dd   :  { %1444 = vmatmul.bf16.vlgmr.msrb.gmra.mxu2 %v1320_v31  ;;  %1506 = vmatmul.bf16.vlgmr.msra.gmra.mxu0 %v1490_v32 }
 0x6de   :  { %1511 = vmatpush.bf16.msra.mxu2 %v2661_v40  ;;  %1579 = vmatpush.msrb.mxu0 %v62_v30  ;;  %v58_v40 = vld [vmem:[%s2789_s2 + $0x58] sm:$0xff]  ;;  %v824_v27 = vpop.permute.xlu1 %823 }
 0x6e0   :  { %1580 = vmatpush.msrb.mxu0 %v61_v35 }
 0x6e2   :  { %1512 = vmatpush.bf16.msra.mxu2 %v2664_v43  ;;  %1581 = vmatpush.msrb.mxu0 %v60_v36  ;;  %v1953_v39 = vld [vmem:[#allocation2 + $0x80] sm:$0xff]  ;;  %v803_v43 = vrot.slane %v2504_v7, 4 }
 0x6e3   :  { %1469 = vmatpush.bf16.msrb.mxu1 %v1953_v39  ;;  %1531 = vmatpush.bf16.msrb.mxu3 %v1953_v39 }
 0x6e4   :  { %1582 = vmatpush.msrb.mxu0 %v59_v38  ;;  %v804_v50 = vadd.f32 %v803_v43, %v2504_v7  ;;  %v51_v7 = vld [vmem:[%s2789_s2 + $0x20] sm:$0xff] }
 0x6e6   :  { %1513 = vmatpush.bf16.msra.mxu2 %v2668_v54  ;;  %1583 = vmatpush.msrb.mxu0 %v58_v40  ;;  %v805_v54 = vrot.slane %v804_v50, 2 }
 0x6e7   :  { %1559 = vmatpush.msra.mxu1 %v62_v30  ;;  %1608 = vmatpush.msra.mxu3 %v62_v30  ;;  %v846_v30 = vadd.f32 %v845_v63, %v824_v27 }
 0x6e8   :  { %1584 = vmatpush.msrb.mxu0 %v57_v42  ;;  %1896 = vmatmul.msk.bf16.vlgmr.msrb.gmra.mxu1 %vm309_vm3, %v1322_v41  ;;  %v806_v45 = vadd.f32 %v805_v54, %v804_v50  ;;  %v1599_v41 = vmul.f32 %v2511_v14, %v2511_v14 }
 0x6e9   :  { %1560 = vmatpush.msra.mxu1 %v61_v35  ;;  %1609 = vmatpush.msra.mxu3 %v61_v35 }
 0x6ea   :  { %1514 = vmatpush.bf16.msra.mxu2 %v2674_v57  ;;  %1585 = vmatpush.msrb.mxu0 %v56_v46  ;;  %v1488_v57 = vunpack.c.h.b16 %v2694_v18  ;;  %v807_v59 = vrot.slane %v806_v45, 1 }
 0x6eb   :  { %1561 = vmatpush.msra.mxu1 %v60_v36  ;;  %1610 = vmatpush.msra.mxu3 %v60_v36 }
 0x6ec   :  { %1586 = vmatpush.msrb.mxu0 %v55_v48  ;;  %1900 = vmatmul.msk.bf16.vlgmr.msrb.gmra.mxu3 %vm309_vm3, %v1492_v51  ;;  %v1491_v61 = vpack.c.b16 %v1488_v57, %v1488_v57  ;;  %v808_v62 = vadd.f32 %v807_v59, %v806_v45 }
 0x6ed   :  { %1562 = vmatpush.msra.mxu1 %v59_v38  ;;  %1611 = vmatpush.msra.mxu3 %v59_v38 }
 0x6ee   :  { %1515 = vmatpush.bf16.msra.mxu2 %v2677_v0  ;;  %1587 = vmatpush.msrb.mxu0 %v54_v49 }
 0x6ef   :  { %1563 = vmatpush.msra.mxu1 %v58_v40  ;;  %1612 = vmatpush.msra.mxu3 %v58_v40 }
 0x6f0   :  { %1588 = vmatpush.msrb.mxu0 %v53_v52 }
 0x6f1   :  { %1564 = vmatpush.msra.mxu1 %v57_v42  ;;  %1613 = vmatpush.msra.mxu3 %v57_v42 }
 0x6f2   :  { %1516 = vmatpush.bf16.msra.mxu2 %v2683_v10  ;;  %1589 = vmatpush.msrb.mxu0 %v52_v53 }
 0x6f3   :  { %1565 = vmatpush.msra.mxu1 %v56_v46  ;;  %1614 = vmatpush.msra.mxu3 %v56_v46 }
 0x6f4   :  { %1590 = vmatpush.msrb.mxu0 %v51_v7 }
 0x6f5   :  { %1566 = vmatpush.msra.mxu1 %v55_v48  ;;  %1615 = vmatpush.msra.mxu3 %v55_v48 }
 0x6f6   :  { %1517 = vmatpush.bf16.msra.mxu2 %v2686_v16  ;;  %1591 = vmatpush.msrb.mxu0 %v50_v55 }
 0x6f7   :  { %1567 = vmatpush.msra.mxu1 %v54_v49  ;;  %1616 = vmatpush.msra.mxu3 %v54_v49 }
 0x6f8   :  { %1592 = vmatpush.msrb.mxu0 %v49_v56 }
 0x6f9   :  { %1568 = vmatpush.msra.mxu1 %v53_v52  ;;  %1617 = vmatpush.msra.mxu3 %v53_v52 }
 0x6fa   :  { %1518 = vmatpush.bf16.msra.mxu2 %v2697_v22  ;;  %1593 = vmatpush.msrb.mxu0 %v48_v58  ;;  %v1313_v22 = vpop.permute.xlu0 %1312 }
 0x6fb   :  { %1569 = vmatpush.msra.mxu1 %v52_v53  ;;  %1618 = vmatpush.msra.mxu3 %v52_v53 }
 0x6fc   :  { %1594 = vmatpush.msrb.mxu0 %v47_v60 }
 0x6fd   :  { %1519 = vmatmul.bf16.vlgmr.msra.gmra.mxu2 %v1491_v61  ;;  %1595 = vmatmul.f32.vlgmr.msrb.gmra.mxu0 %v808_v62 }
 0x6fe   :  { %1570 = vmatpush.msra.mxu1 %v51_v7  ;;  %1619 = vmatpush.msra.mxu3 %v51_v7 }
 0x700   :  { %1571 = vmatpush.msra.mxu1 %v50_v55  ;;  %1620 = vmatpush.msra.mxu3 %v50_v55 }
 0x702   :  { %1572 = vmatpush.msra.mxu1 %v49_v56  ;;  %1621 = vmatpush.msra.mxu3 %v49_v56 }
 0x704   :  { %1573 = vmatpush.msra.mxu1 %v48_v58  ;;  %1622 = vmatpush.msra.mxu3 %v48_v58 }
 0x706   :  { %1574 = vmatpush.msra.mxu1 %v47_v60  ;;  %1623 = vmatpush.msra.mxu3 %v47_v60 }
 0x75a   :  { %v1507_v0 = vpop.f32.mrf.mxu0 }
 0x75b   :  { %v1508_v13 = vadd.f32 %v1507_v0, %v1483_v12 }
 0x75f   :  { %v1458_v2 = vpop.f32.mrf.mxu3 }
 0x760   :  { %v1445_v1 = vpop.f32.mrf.mxu2 }
 0x761   :  { %v1446_v23 = vadd.f32 %v1445_v1, %v1313_v22 }
 0x762   :  { %v1509_v3 = vpop.f32.mrf.mxu0 }
 0x763   :  { %v1459_v26 = vadd.f32 %v1458_v2, %v1446_v23 }
 0x765   :  { %v1471_v4 = vpop.f32.mrf.mxu1 }
 0x766   :  { %v1472_v28 = vadd.f32 %v1471_v4, %v1459_v26 }
 0x767   :  { %v1460_v6 = vpop.f32.mrf.mxu3 }
 0x768   :  { %v1447_v5 = vpop.f32.mrf.mxu2  ;;  %v1551_v33 = vadd.f32 %v1472_v28, %v846_v30 }
 0x76d   :  { %v1473_v9 = vpop.f32.mrf.mxu1 }
 0x76f   :  { %v1533_v10 = vpop.f32.mrf.mxu3 }
 0x777   :  { %v1535_v11 = vpop.f32.mrf.mxu3 }
 0x77a   :  { %v1596_v56 = vpop.f32.mrf.mxu0 }
 0x780   :  { %v1520_v8 = vpop.f32.mrf.mxu2 }
 0x781   :  { %v1521_v15 = vadd.f32 %v1520_v8, %v1508_v13 }
 0x783   :  { %v1534_v16 = vadd.f32 %v1533_v10, %v1521_v15 }
 0x785   :  { %v1537_v17 = vadd.f32 2.0, %v1534_v16 }
 0x787   :  { %v1538_v18 = vand.u32 2147483647, %v1537_v17  ;;  %vm1544_vm5 = vcmp.ge.f32.partialorder %v1537_v17, 0.0  ;;  %v1547_v34 = vmin.f32 %v1537_v17, 0.0 }
 0x788   :  { %v1522_v19 = vpop.f32.mrf.mxu2 }
 0x789   :  { %v1539_v20 = vsub.f32 0.0, %v1538_v18 }
 0x78b   :  { %v1540_v21 = vmul.f32 1.442695, %v1539_v20 }
 0x78d   :  { %2219 = vpow2.f32 %v1540_v21 }
 0x793   :  { %v2220_v24 = vpop.eup %2219 }
 0x794   :  { %v1542_v25 = vadd.f32 1.0, %v2220_v24 }
 0x796   :  { %2221 = vrcp.f32 %v1542_v25 }
 0x797   :  { %2223 = vlog2.f32 %v1542_v25 }
 0x79c   :  { %v2222_v29 = vpop.eup %2221 }
 0x79d   :  { %v2224_v31 = vpop.eup %2223  ;;  %v1545_v32 = vmul.f32 %v2222_v29, %v2220_v24 }
 0x79e   :  { %v1549_v35 = vmul.f32 0.6931472, %v2224_v31 }
 0x79f   :  { %v1546_v36 = vsel %vm1544_vm5, %v2222_v29, %v1545_v32 }
 0x7a0   :  { %v1550_v37 = vsub.f32 %v1547_v34, %v1549_v35  ;;  %v1552_v38 = vmul.f32 %v1551_v33, %v1546_v36 }
 0x7a2   :  { %v1553_v39 = vrot.slane %v1550_v37, 4  ;;  %v1600_v40 = vmul.f32 %v1552_v38, %v1552_v38  ;;  %1630 = vst [vmem:[%s2788_s13 + $0x8] sm:$0xff] %v1552_v38 }
 0x7a4   :  { %v1554_v42 = vadd.f32 %v1553_v39, %v1550_v37  ;;  %v1601_v44 = vadd.f32 %v1600_v40, %v1599_v41 }
 0x7a6   :  { %v1555_v43 = vrot.slane %v1554_v42, 2  ;;  %v1602_v46 = vrot.slane %v1601_v44, 4 }
 0x7a8   :  { %v1556_v47 = vadd.f32 %v1555_v43, %v1554_v42  ;;  %v1603_v48 = vadd.f32 %v1602_v46, %v1601_v44 }
 0x7aa   :  { %v1557_v49 = vrot.slane %v1556_v47, 1  ;;  %v1604_v50 = vrot.slane %v1603_v48, 2 }
 0x7ac   :  { %v1558_v51 = vadd.f32 %v1557_v49, %v1556_v47  ;;  %v1605_v52 = vadd.f32 %v1604_v50, %v1603_v48 }
 0x7ae   :  { %1575 = vmatmul.f32.vlgmr.msra.gmra.mxu1 %v1558_v51  ;;  %v1606_v53 = vrot.slane %v1605_v52, 1 }
 0x7b0   :  { %v1607_v54 = vadd.f32 %v1606_v53, %v1605_v52 }
 0x7b2   :  { %1624 = vmatmul.f32.vlgmr.msra.gmra.mxu3 %v1607_v54 }
 0x82b   :  { %v1576_v7 = vpop.f32.mrf.mxu1 }
 0x82c   :  { %v1597_v14 = vadd.f32 %v1596_v56, %v1576_v7 }
 0x835   :  { %v1625_v55 = vpop.f32.mrf.mxu3 }
 0x836   :  { %v1628_v45 = vmul.f32 -0.5, %v1625_v55 }
 0x838   :  { %v1632_v57 = vrot.slane %v1628_v45, 7 }
 0x83a   :  { %v1635_v58 = vsel %vm1634_vm6, %v1597_v14, %v1632_v57 }
 0x83b   :  { %1636 = vst [vmem:[%s2790_s14] sm:$0x3] %v1635_v58 }

</bundles_post_ra>
